<compile_context>
chip_gen: v7x
topology: tpu7x:2x2x1
jax: 0.10.0
libtpu: 0.0.40
codegen_flags: <defaults>
</compile_context>

<pallas_src>
import math

import jax
import jax.numpy as jnp
from jax.experimental import pallas as pl
from jax.experimental.pallas import tpu as pltpu


# --------------------------------- kernel ------------------------------------

def _make_dwconv_kernel(H, W, C, compute_dtype):
    N = H * W

    def kernel(x_ref, w_ref, b_ref, o_ref, pad_ref):
        # (1, N, C) tokens -> (H, W, C) channel-last image.
        x = x_ref[0].astype(compute_dtype).reshape(H, W, C)

        # Zero only the halo; the interior is fully overwritten below.
        zrow = jnp.zeros((1, W + 2, C), compute_dtype)
        pad_ref[0:1, :, :] = zrow
        pad_ref[H + 1:H + 2, :, :] = zrow
        zcol = jnp.zeros((H, 1, C), compute_dtype)
        pad_ref[1:H + 1, 0:1, :] = zcol
        pad_ref[1:H + 1, W + 1:W + 2, :] = zcol
        pad_ref[1:H + 1, 1:W + 1, :] = x

        # 3 W-shifted slabs (the only sublane-misaligned reads); H-offsets are
        # free outer-dim slices of these values.
        cols = [pad_ref[:, dj:dj + W, :] for dj in range(3)]   # each (H+2, W, C)

        acc = None
        for di in range(3):
            for dj in range(3):
                tap = w_ref[di:di + 1, dj:dj + 1, :].astype(compute_dtype)  # (1,1,C)
                t = cols[dj][di:di + H] * tap                               # (H,W,C)
                acc = t if acc is None else acc + t

        out = acc.astype(jnp.float32).reshape(N, C) + b_ref[...]           # (N, C)
        o_ref[0] = out.astype(o_ref.dtype)

    return kernel


# --------------------------------- wrapper -----------------------------------

def dwconv(x, w, b, H, W, *, compute_dtype=jnp.float32):
    """Depthwise 3x3 'same' conv + bias on (B, N, C) tokens (N = H*W).

    w: (3, 3, C) with w[kh, kw, c] == torch_weight[c, 0, kh, kw];  b: (C,).
    """
    B, N, C = x.shape
    assert N == H * W
    assert w.shape == (3, 3, C)
    b2 = b.reshape(1, C)

    kernel = _make_dwconv_kernel(H, W, C, compute_dtype)

    return pl.pallas_call(
        kernel,
        out_shape=jax.ShapeDtypeStruct((B, N, C), x.dtype),
        grid_spec=pltpu.PrefetchScalarGridSpec(
            num_scalar_prefetch=0,
            grid=(B,),
            in_specs=[
                pl.BlockSpec((1, N, C), lambda bi: (bi, 0, 0)),
                pl.BlockSpec((3, 3, C), lambda bi: (0, 0, 0)),
                pl.BlockSpec((1, C), lambda bi: (0, 0)),
            ],
            out_specs=pl.BlockSpec((1, N, C), lambda bi: (bi, 0, 0)),
            scratch_shapes=[pltpu.VMEM((H + 2, W + 2, C), compute_dtype)],
        ),
        compiler_params=pltpu.CompilerParams(
            dimension_semantics=("parallel",),   # shards B across TCs on v7x
        ),
    )(x, w, b2)


# ----------------------------------- main ------------------------------------

if __name__ == "__main__":
    B, H, W, C = 2, 16, 16, 128       # C multiple of 128 -> lane-dense output
    N = H * W

    key = jax.random.PRNGKey(0)
    kx, kw, kb = jax.random.split(key, 3)
    x = jax.random.normal(kx, (B, N, C), jnp.float32)
    w = jax.random.normal(kw, (3, 3, C), jnp.float32) * math.sqrt(2.0 / 9.0)
    b = jax.random.normal(kb, (C,), jnp.float32) * 0.02

    out = dwconv(x, w, b, H, W)
    out = jax.block_until_ready(out)

    # Pure-JAX reference (same semantics as nn.Conv2d(C, C, 3, 1, 1, groups=C)).
    x_img = x.reshape(B, H, W, C)
    ref = jax.lax.conv_general_dilated(
        x_img, w.reshape(3, 3, 1, C),
        window_strides=(1, 1), padding=((1, 1), (1, 1)),
        dimension_numbers=("NHWC", "HWIO", "NHWC"),
        feature_group_count=C,
        precision=jax.lax.Precision.HIGHEST,
    ) + b
    ref = ref.reshape(B, N, C)

    assert out.shape == (B, N, C)
    assert bool(jnp.all(jnp.isfinite(out)))
    max_err = float(jnp.max(jnp.abs(out - ref)))
    assert max_err < 1e-3, f"max abs err {max_err}"
    print("KERNEL_OK")
</pallas_src>

<mosaic_0001>
module attributes {stable_mosaic.version = 11 : i64} {
  func.func @kernel(%arg0: i32, %arg1: memref<1x256x128xf32, #tpu.memory_space<vmem>>, %arg2: memref<3x3x128xf32, #tpu.memory_space<vmem>>, %arg3: memref<1x128xf32, #tpu.memory_space<vmem>>, %arg4: memref<1x256x128xf32, #tpu.memory_space<vmem>>, %arg5: memref<18x18x128xf32, #tpu.memory_space<vmem>>) attributes {dimension_semantics = [#tpu.dimension_semantics<parallel>], iteration_bounds = array<i64: 2>, scalar_prefetch = 0 : i64, scratch_operands = 1 : i64, tpu.core_type = #tpu.core_type<tc>, window_params = [{transform_indices = @transform_0, window_bounds = array<i64: 1, 256, 128>}, {pipeline_mode = #tpu.pipeline_mode<synchronous>, transform_indices = @transform_1, window_bounds = array<i64: 3, 3, 128>}, {pipeline_mode = #tpu.pipeline_mode<synchronous>, transform_indices = @transform_2, window_bounds = array<i64: 1, 128>}, {transform_indices = @transform_3, window_bounds = array<i64: 1, 256, 128>}]} {
    %c0 = arith.constant 0 : index
    %c0_0 = arith.constant 0 : index
    %c0_1 = arith.constant 0 : index
    %0 = vector.load %arg1[%c0, %c0_0, %c0_1] : memref<1x256x128xf32, #tpu.memory_space<vmem>>, vector<1x256x128xf32>
    %1 = vector.shape_cast %0 : vector<1x256x128xf32> to vector<256x128xf32>
    %2 = vector.shape_cast %1 : vector<256x128xf32> to vector<16x16x128xf32>
    %cst = arith.constant 0.000000e+00 : f32
    %3 = vector.broadcast %cst : f32 to vector<1x18x128xf32>
    %c0_2 = arith.constant 0 : index
    %c0_3 = arith.constant 0 : index
    %c0_4 = arith.constant 0 : index
    %4 = vector.load %arg5[%c0_2, %c0_3, %c0_4] : memref<18x18x128xf32, #tpu.memory_space<vmem>>, vector<1x18x128xf32>
    tpu.vector_store %arg5[%c0_2, %c0_3, %c0_4], %3 {strides = array<i32>} : memref<18x18x128xf32, #tpu.memory_space<vmem>>, vector<1x18x128xf32>,
    %c17 = arith.constant 17 : index
    %c0_5 = arith.constant 0 : index
    %c0_6 = arith.constant 0 : index
    %5 = vector.load %arg5[%c17, %c0_5, %c0_6] : memref<18x18x128xf32, #tpu.memory_space<vmem>>, vector<1x18x128xf32>
    tpu.vector_store %arg5[%c17, %c0_5, %c0_6], %3 {strides = array<i32>} : memref<18x18x128xf32, #tpu.memory_space<vmem>>, vector<1x18x128xf32>,
    %cst_7 = arith.constant 0.000000e+00 : f32
    %6 = vector.broadcast %cst_7 : f32 to vector<16x1x128xf32>
    %c1 = arith.constant 1 : index
    %c0_8 = arith.constant 0 : index
    %c0_9 = arith.constant 0 : index
    %7 = vector.load %arg5[%c1, %c0_8, %c0_9] : memref<18x18x128xf32, #tpu.memory_space<vmem>>, vector<16x1x128xf32>
    tpu.vector_store %arg5[%c1, %c0_8, %c0_9], %6 {strides = array<i32>} : memref<18x18x128xf32, #tpu.memory_space<vmem>>, vector<16x1x128xf32>,
    %c1_10 = arith.constant 1 : index
    %c17_11 = arith.constant 17 : index
    %c0_12 = arith.constant 0 : index
    %8 = vector.load %arg5[%c1_10, %c17_11, %c0_12] : memref<18x18x128xf32, #tpu.memory_space<vmem>>, vector<16x1x128xf32>
    tpu.vector_store %arg5[%c1_10, %c17_11, %c0_12], %6 {strides = array<i32>} : memref<18x18x128xf32, #tpu.memory_space<vmem>>, vector<16x1x128xf32>,
    %c1_13 = arith.constant 1 : index
    %c1_14 = arith.constant 1 : index
    %c0_15 = arith.constant 0 : index
    %9 = vector.load %arg5[%c1_13, %c1_14, %c0_15] : memref<18x18x128xf32, #tpu.memory_space<vmem>>, vector<16x16x128xf32>
    tpu.vector_store %arg5[%c1_13, %c1_14, %c0_15], %2 {strides = array<i32>} : memref<18x18x128xf32, #tpu.memory_space<vmem>>, vector<16x16x128xf32>,
    %c0_16 = arith.constant 0 : index
    %c0_17 = arith.constant 0 : index
    %c0_18 = arith.constant 0 : index
    %10 = vector.load %arg5[%c0_16, %c0_17, %c0_18] : memref<18x18x128xf32, #tpu.memory_space<vmem>>, vector<18x16x128xf32>
    %c0_19 = arith.constant 0 : index
    %c1_20 = arith.constant 1 : index
    %c0_21 = arith.constant 0 : index
    %11 = vector.load %arg5[%c0_19, %c1_20, %c0_21] : memref<18x18x128xf32, #tpu.memory_space<vmem>>, vector<18x16x128xf32>
    %c0_22 = arith.constant 0 : index
    %c2 = arith.constant 2 : index
    %c0_23 = arith.constant 0 : index
    %12 = vector.load %arg5[%c0_22, %c2, %c0_23] : memref<18x18x128xf32, #tpu.memory_space<vmem>>, vector<18x16x128xf32>
    %c0_24 = arith.constant 0 : index
    %c0_25 = arith.constant 0 : index
    %c0_26 = arith.constant 0 : index
    %13 = vector.load %arg2[%c0_24, %c0_25, %c0_26] : memref<3x3x128xf32, #tpu.memory_space<vmem>>, vector<1x1x128xf32>
    %14 = vector.extract_strided_slice %10 {offsets = [0, 0, 0], sizes = [16, 16, 128], strides = [1, 1, 1]} : vector<18x16x128xf32> to vector<16x16x128xf32>
    %15 = vector.broadcast %13 : vector<1x1x128xf32> to vector<16x16x128xf32>
    %16 = arith.mulf %14, %15 : vector<16x16x128xf32>
    %c0_27 = arith.constant 0 : index
    %c1_28 = arith.constant 1 : index
    %c0_29 = arith.constant 0 : index
    %17 = vector.load %arg2[%c0_27, %c1_28, %c0_29] : memref<3x3x128xf32, #tpu.memory_space<vmem>>, vector<1x1x128xf32>
    %18 = vector.extract_strided_slice %11 {offsets = [0, 0, 0], sizes = [16, 16, 128], strides = [1, 1, 1]} : vector<18x16x128xf32> to vector<16x16x128xf32>
    %19 = vector.broadcast %17 : vector<1x1x128xf32> to vector<16x16x128xf32>
    %20 = arith.mulf %18, %19 : vector<16x16x128xf32>
    %21 = arith.addf %16, %20 : vector<16x16x128xf32>
    %c0_30 = arith.constant 0 : index
    %c2_31 = arith.constant 2 : index
    %c0_32 = arith.constant 0 : index
    %22 = vector.load %arg2[%c0_30, %c2_31, %c0_32] : memref<3x3x128xf32, #tpu.memory_space<vmem>>, vector<1x1x128xf32>
    %23 = vector.extract_strided_slice %12 {offsets = [0, 0, 0], sizes = [16, 16, 128], strides = [1, 1, 1]} : vector<18x16x128xf32> to vector<16x16x128xf32>
    %24 = vector.broadcast %22 : vector<1x1x128xf32> to vector<16x16x128xf32>
    %25 = arith.mulf %23, %24 : vector<16x16x128xf32>
    %26 = arith.addf %21, %25 : vector<16x16x128xf32>
    %c1_33 = arith.constant 1 : index
    %c0_34 = arith.constant 0 : index
    %c0_35 = arith.constant 0 : index
    %27 = vector.load %arg2[%c1_33, %c0_34, %c0_35] : memref<3x3x128xf32, #tpu.memory_space<vmem>>, vector<1x1x128xf32>
    %28 = vector.extract_strided_slice %10 {offsets = [1, 0, 0], sizes = [16, 16, 128], strides = [1, 1, 1]} : vector<18x16x128xf32> to vector<16x16x128xf32>
    %29 = vector.broadcast %27 : vector<1x1x128xf32> to vector<16x16x128xf32>
    %30 = arith.mulf %28, %29 : vector<16x16x128xf32>
    %31 = arith.addf %26, %30 : vector<16x16x128xf32>
    %c1_36 = arith.constant 1 : index
    %c1_37 = arith.constant 1 : index
    %c0_38 = arith.constant 0 : index
    %32 = vector.load %arg2[%c1_36, %c1_37, %c0_38] : memref<3x3x128xf32, #tpu.memory_space<vmem>>, vector<1x1x128xf32>
    %33 = vector.extract_strided_slice %11 {offsets = [1, 0, 0], sizes = [16, 16, 128], strides = [1, 1, 1]} : vector<18x16x128xf32> to vector<16x16x128xf32>
    %34 = vector.broadcast %32 : vector<1x1x128xf32> to vector<16x16x128xf32>
    %35 = arith.mulf %33, %34 : vector<16x16x128xf32>
    %36 = arith.addf %31, %35 : vector<16x16x128xf32>
    %c1_39 = arith.constant 1 : index
    %c2_40 = arith.constant 2 : index
    %c0_41 = arith.constant 0 : index
    %37 = vector.load %arg2[%c1_39, %c2_40, %c0_41] : memref<3x3x128xf32, #tpu.memory_space<vmem>>, vector<1x1x128xf32>
    %38 = vector.extract_strided_slice %12 {offsets = [1, 0, 0], sizes = [16, 16, 128], strides = [1, 1, 1]} : vector<18x16x128xf32> to vector<16x16x128xf32>
    %39 = vector.broadcast %37 : vector<1x1x128xf32> to vector<16x16x128xf32>
    %40 = arith.mulf %38, %39 : vector<16x16x128xf32>
    %41 = arith.addf %36, %40 : vector<16x16x128xf32>
    %c2_42 = arith.constant 2 : index
    %c0_43 = arith.constant 0 : index
    %c0_44 = arith.constant 0 : index
    %42 = vector.load %arg2[%c2_42, %c0_43, %c0_44] : memref<3x3x128xf32, #tpu.memory_space<vmem>>, vector<1x1x128xf32>
    %43 = vector.extract_strided_slice %10 {offsets = [2, 0, 0], sizes = [16, 16, 128], strides = [1, 1, 1]} : vector<18x16x128xf32> to vector<16x16x128xf32>
    %44 = vector.broadcast %42 : vector<1x1x128xf32> to vector<16x16x128xf32>
    %45 = arith.mulf %43, %44 : vector<16x16x128xf32>
    %46 = arith.addf %41, %45 : vector<16x16x128xf32>
    %c2_45 = arith.constant 2 : index
    %c1_46 = arith.constant 1 : index
    %c0_47 = arith.constant 0 : index
    %47 = vector.load %arg2[%c2_45, %c1_46, %c0_47] : memref<3x3x128xf32, #tpu.memory_space<vmem>>, vector<1x1x128xf32>
    %48 = vector.extract_strided_slice %11 {offsets = [2, 0, 0], sizes = [16, 16, 128], strides = [1, 1, 1]} : vector<18x16x128xf32> to vector<16x16x128xf32>
    %49 = vector.broadcast %47 : vector<1x1x128xf32> to vector<16x16x128xf32>
    %50 = arith.mulf %48, %49 : vector<16x16x128xf32>
    %51 = arith.addf %46, %50 : vector<16x16x128xf32>
    %c2_48 = arith.constant 2 : index
    %c2_49 = arith.constant 2 : index
    %c0_50 = arith.constant 0 : index
    %52 = vector.load %arg2[%c2_48, %c2_49, %c0_50] : memref<3x3x128xf32, #tpu.memory_space<vmem>>, vector<1x1x128xf32>
    %53 = vector.extract_strided_slice %12 {offsets = [2, 0, 0], sizes = [16, 16, 128], strides = [1, 1, 1]} : vector<18x16x128xf32> to vector<16x16x128xf32>
    %54 = vector.broadcast %52 : vector<1x1x128xf32> to vector<16x16x128xf32>
    %55 = arith.mulf %53, %54 : vector<16x16x128xf32>
    %56 = arith.addf %51, %55 : vector<16x16x128xf32>
    %57 = vector.shape_cast %56 : vector<16x16x128xf32> to vector<256x128xf32>
    %c0_51 = arith.constant 0 : index
    %c0_52 = arith.constant 0 : index
    %58 = vector.load %arg3[%c0_51, %c0_52] : memref<1x128xf32, #tpu.memory_space<vmem>>, vector<1x128xf32>
    %59 = vector.broadcast %58 : vector<1x128xf32> to vector<256x128xf32>
    %60 = arith.addf %57, %59 : vector<256x128xf32>
    %c0_53 = arith.constant 0 : index
    %c0_54 = arith.constant 0 : index
    %c0_55 = arith.constant 0 : index
    %61 = vector.load %arg4[%c0_53, %c0_54, %c0_55] : memref<1x256x128xf32, #tpu.memory_space<vmem>>, vector<1x256x128xf32>
    %62 = vector.shape_cast %61 : vector<1x256x128xf32> to vector<256x128xf32>
    %63 = vector.shape_cast %60 : vector<256x128xf32> to vector<1x256x128xf32>
    tpu.vector_store %arg4[%c0_53, %c0_54, %c0_55], %63 {strides = array<i32>} : memref<1x256x128xf32, #tpu.memory_space<vmem>>, vector<1x256x128xf32>,
    return
  }
  func.func @transform_0(%arg0: i32) -> (i32, i32, i32) {
    %c0_i32 = arith.constant 0 : i32
    %c0_i32_0 = arith.constant 0 : i32
    %c0_i32_1 = arith.constant 0 : i32
    return %arg0, %c0_i32, %c0_i32_0 : i32, i32, i32
  }
  func.func @transform_1(%arg0: i32) -> (i32, i32, i32) {
    %c0_i32 = arith.constant 0 : i32
    %c0_i32_0 = arith.constant 0 : i32
    %c0_i32_1 = arith.constant 0 : i32
    %c0_i32_2 = arith.constant 0 : i32
    return %c0_i32, %c0_i32_0, %c0_i32_1 : i32, i32, i32
  }
  func.func @transform_2(%arg0: i32) -> (i32, i32) {
    %c0_i32 = arith.constant 0 : i32
    %c0_i32_0 = arith.constant 0 : i32
    %c0_i32_1 = arith.constant 0 : i32
    return %c0_i32, %c0_i32_0 : i32, i32
  }
  func.func @transform_3(%arg0: i32) -> (i32, i32, i32) {
    %c0_i32 = arith.constant 0 : i32
    %c0_i32_0 = arith.constant 0 : i32
    %c0_i32_1 = arith.constant 0 : i32
    return %arg0, %c0_i32, %c0_i32_0 : i32, i32, i32
  }
}

</mosaic_0001>

<bundles_post_ra>
// kernel: tpu_custom_call.1
= control target key start
LH: loop header
LB: loop body
LE: loop exit
PB: predicated region body
PF: predicated region fallthrough
CT: control target
= control target key end

     0   :  { %8 = vsyncpa [#allocation4], 0  ;;  %s2257_s0 = inlined_call_operand.hbm [shape: f32[2,256,128], index: 0, kind: input, shape index: {}]   ;;  %s2258_s1 = inlined_call_operand.hbm [shape: f32[3,3,128], index: 1, kind: input, shape index: {}]   ;;  %s2259_s2 = inlined_call_operand.vmem [shape: f32[1,128], index: 2, kind: input, shape index: {}]   ;;  %s2260_s3 = inlined_call_operand.hbm [shape: f32[2,256,128], index: 3, kind: output, shape index: {}]  }
   0x1   :  { %10 = vsyncpa [#allocation4 + $0x1], 0 }
   0x2   :  { %11 = vsyncpa [#allocation7], 0 }
   0x3   :  { %12 = vsyncpa [#allocation5], 0 }
   0x4   :  { %14 = vsyncpa [#allocation5 + $0x1], 0  ;;  %s1438_s12 = smov 0   ;;  %s1440_s13 = smov 0  }
   0x5   :  { %s1442_s14 = smov 0   ;;  %s1444_s15 = smov 0  }
   0x6 LB: > { %s1459_s16 = sadd.s32 4294967295, %s1406_s15   ;;  %s1175_s17 = sadd.s32 4294967294, %s1406_s15   ;;  %s1406_s15 = sphi %s1444_s15, %s2300_s15   ;;  %s1402_s14 = sphi %s1442_s14, %s2299_s14   ;;  %s1398_s13 = sphi %s1440_s13, %s2298_s13   ;;  %s1394_s12 = sphi %s1438_s12, %s2297_s12  }
   0x7   : > { %p40_p0 = scmp.ne.s32.totalorder %s1398_s13, %s1394_s12  ;;  %p2261_p1 = scmp.eq.s32.totalorder %s1459_s16, 0 }
   0x8   : > { %p112_p3 = scmp.eq.s32.totalorder %s1175_s17, 1  ;;  %p1176_p5 = scmp.ge.s32.totalorder %s1406_s15, 1 }
   0x9   : > { %p1468_p4 = por %p2261_p1, %p40_p0  ;;  %p119_p7 = scmp.lt.s32.totalorder %s1406_s15, 3 }
   0xa   : > { %p1473_p6 = por %p112_p3, %p40_p0  ;;  %s1408_s21 = smov [#allocation6]  }
   0xb   : > { %s2274_s18 = scalar_select %p1468_p4, 1, 0 }
   0xc   : > { %s2275_s19 = scalar_select %p1473_p6, 1, 0 }
   0xd   : > { %p1478_p8 = pnand %p1176_p5, %p119_p7  ;;  %s131_s22 = sshll.u32 %s1408_s21, 4  ;;  %s1482_s22 = int_to_ptr.vmem [resolvable:$true] %s131_s22 }
   0xe   : > { %s1494_s24 = sadd.s32 1, %s1406_s15   ;;  %s27_s25 = sadd.s32 1, %s1402_s14 }
   0xf   : > { %s2276_s20 = scalar_select %p1478_p8, 1, 0 }
  0x10   : > { %p1211_p9 = pneg %p1478_p8  ;;  %s24_s26 = ssub.s32 %s1406_s15, %s1494_s24 }
  0x11   : > { %s1278_s29 = scalar_lea.hbm %s2258_s1, 192 }
  0x12   : > { %p1489_p11 = pnand %p1211_p9, %p2261_p1  ;;  %p1279_p12 = scmp.ne.s32.totalorder %s2258_s1, %s1278_s29 }
  0x13   : > { %p1285_p5 = scmp.lt.u32.totalorder %s1278_s29, %s2258_s1 }
  0x14   : > { %p1280_p13 = pneg %p1489_p11 }
  0x16   : > { %p1281_p0 = pnand %p1280_p13, %p1279_p12 }
  0x18   : > { %p1282_p3 = pneg %p1281_p0 }
  0x1a   : > { %p1287_p7 = pnand %p1285_p5, %p1282_p3 }
  0x1c   : > { %1290 = shalt.err (!%p1287_p7)
}
  0x1d   : > { %s1291_s7 = scalar_lea.vmem %s1482_s22, 192  ;;  %p1299_p2 = scmp.lt.s32.totalorder %s1482_s22, %s1482_s22 }
  0x1e   : > { %p1292_p9 = scmp.ne.s32.totalorder %s1482_s22, %s1291_s7  ;;  %p1300_p6 = scmp.lt.s32.totalorder %s1291_s7, %s1291_s7 }
  0x20   : > { %p1294_p10 = pnand %p1292_p9, %p1280_p13  ;;  %p1301_p4 = por %p1300_p6, %p1299_p2 }
  0x22   : > { %p1295_p1 = pneg %p1294_p10 }
  0x24   : > { %p1302_p8 = pnand %p1301_p4, %p1295_p1 }
  0x26   : > { %1305 = shalt.err (!%p1302_p8)
}
  0x27   : > { %s1409_s8 = smov 64   ;;  %s1410_s9 = smov 4  }
  0x28   : > { %1214 = dma.hbm_to_vmem [thread:$0]  (!%p1489_p11), %s2258_s1, 192, %s1482_s22, [#allocation7], %s1409_s8, %s1409_s8, %s1410_s9  }
  0x29   : > { %p25_p2 = scmp.eq.s32.totalorder %s24_s26, 0  ;;  %p34_p1 = scmp.ne.s32.totalorder %s1402_s14, %s1398_s13 }
  0x2a   : > { %p35_p4 = scmp.eq.s32.totalorder %s1406_s15, 0  ;;  %p1224_p6 = scmp.lt.s32.totalorder %s1406_s15, 2 }
  0x2b   : > { %s1525_s17 = scalar_select %p25_p2, %s1402_s14, %s27_s25  }
  0x2c   : > { %p36_p8 = por %p35_p4, %p34_p1  ;;  %p2278_p10 = scmp.eq.s32.totalorder %s1459_s16, 1 }
  0x2d   : > { %s148_s27 = sand.u32 1, %s1402_s14   ;;  %s1201_s28 = sshll.u32 %s1406_s15, 12 }
  0x2e   : > { %p1529_p12 = por %p2278_p10, %p34_p1  ;;  %s1179_s29 = sshll.u32 %s148_s27, 8 }
  0x2f   : > { %s1538_s4 = scalar_lea.hbm %s2257_s0, %s1201_s28  ;;  %s152_s22 = scalar_lea.vmem [#allocation3], %s1179_s29 }
  0x30   : > { %s159_s25 = sshll.u32 %s152_s22, 4  ;;  %p1540_p11 = pnand %p1224_p6, %p36_p8  ;;  %s1544_s25 = int_to_ptr.vmem [resolvable:$true] %s159_s25 }
  0x31   : > { %s1546_s5 = scalar_lea.sflag [#allocation4], %s148_s27  ;;  %s1306_s6 = scalar_lea.hbm %s1538_s4, 4096 }
  0x32   : > { %p1307_p13 = scmp.ne.s32.totalorder %s1538_s4, %s1306_s6  ;;  %p1308_p0 = pneg %p1540_p11 }
  0x33   : > { %s1311_s9 = scalar_lea.hbm %s2257_s0, 8192  ;;  %p1312_p7 = scmp.lt.u32.totalorder %s1538_s4, %s2257_s0 }
  0x34   : > { %p1309_p3 = pnand %p1308_p0, %p1307_p13  ;;  %p1313_p9 = scmp.lt.u32.totalorder %s1311_s9, %s1306_s6 }
  0x35   : > { %p1315_p1 = scmp.lt.u32.totalorder %s1306_s6, %s1538_s4 }
  0x36   : > { %p1310_p5 = pneg %p1309_p3  ;;  %p1314_p2 = por %p1313_p9, %p1312_p7 }
  0x38   : > { %p1316_p4 = por %p1315_p1, %p1314_p2 }
  0x3a   : > { %p1317_p6 = pnand %p1316_p4, %p1310_p5 }
  0x3c   : > { %1320 = shalt.err (!%p1317_p6)
}
  0x3d   : > { %s1321_s27 = scalar_lea.vmem %s1544_s25, 4096  ;;  %s1411_s28 = smov [#allocation3]  }
  0x3e   : > { %p1322_p8 = scmp.ne.s32.totalorder %s1544_s25, %s1321_s27  ;;  %s1326_s29 = sshll.u32 %s1411_s28, 4  ;;  %s1327_s29 = int_to_ptr.vmem [resolvable:$false] %s1326_s29 }
  0x3f   : > { %s1328_s23 = scalar_lea.vmem %s1327_s29, 8192  ;;  %p1329_p3 = scmp.lt.s32.totalorder %s1544_s25, %s1327_s29 }
  0x40   : > { %p1324_p10 = pnand %p1322_p8, %p1308_p0  ;;  %p1330_p7 = scmp.lt.s32.totalorder %s1328_s23, %s1321_s27 }
  0x42   : > { %p1325_p13 = pneg %p1324_p10  ;;  %p1331_p9 = por %p1330_p7, %p1329_p3 }
  0x44   : > { %p1332_p2 = pnand %p1331_p9, %p1325_p13 }
  0x46   : > { %1335 = shalt.err (!%p1332_p2)
}
  0x47   : > { %s1412_s30 = smov 128   ;;  %s1413_s22 = smov 8  }
  0x48   : > { %1218 = dma.hbm_to_vmem [thread:$0]  (!%p1540_p11), %s1538_s4, 4096, %s1544_s25, %s1546_s5, %s1412_s30, %s1412_s30, %s1413_s22  }
  0x49   : > { %p2281_p0 = scmp.ne.s32.totalorder %s2276_s20, 0 }
  0x4b   : > { %171 = sbr.rel (%p2281_p0) target bundleno = 285 (0x11d), region = 32 }
  0x52   : > { %s1577_s6 = sand.u32 1, %s1398_s13   ;;  %p2282_p5 = scmp.ne.s32.totalorder %s2274_s18, 0 }
  0x53   : > { %s1183_s7 = sshll.u32 %s1577_s6, 8  ;;  %s174_s8 = scalar_lea.sflag [#allocation4], %s1577_s6 }
  0x54   : > { %s1583_s9 = scalar_lea.vmem [#allocation3], %s1183_s7 }
  0x55   : > { %1381 = dma.done.wait (%p2282_p5), %s174_s8, 4096  }
  0x56   : > { %1383 = vsyncadd (%p2282_p5), %s174_s8, 4294963200  ;;  %p2283_p11 = scmp.eq.s32.totalorder %s1459_s16, 0 }
  0x58   : > { %1385 = dma.done.wait (%p2283_p11), [#allocation7], 192   ;;  %p2284_p1 = pmov %p2283_p11 }
  0x59   : > { %v1414_v0 = vmov 0.0   ;;  %v1594_v1 = vld [vmem:[%s1583_s9] sm:$0xff]  ;;  %v1597_v2 = vld [vmem:[%s1583_s9 + $0x8] sm:$0xff]  ;;  %v1600_v3 = vld [vmem:[%s1583_s9 + $0x10] sm:$0xff]  ;;  %s1788_s4 = scalar_lea.vmem [#allocation8], %s1183_s7  ;;  %s1202_s5 = sshll.u32 %s1459_s16, 12 }
  0x5a   : > { %1387 = vsyncadd (%p2284_p1), [#allocation7], 4294967104  ;;  %236 = vst [vmem:[#allocation2] sm:$0xff] %v1414_v0  ;;  %v1606_v4 = vld [vmem:[%s1583_s9 + $0x18] sm:$0xff]  ;;  %v1609_v5 = vld [vmem:[%s1583_s9 + $0x20] sm:$0xff]  ;;  %s1092_s10 = sshll.u32 %s1788_s4, 4  ;;  %s2208_s28 = scalar_lea.hbm %s2260_s3, %s1202_s5  ;;  %s2210_s10 = int_to_ptr.vmem [resolvable:$true] %s1092_s10 }
  0x5b   : > { %237 = vst [vmem:[#allocation2 + $0x8] sm:$0xff] %v1414_v0  ;;  %238 = vst [vmem:[#allocation2 + $0x10] sm:$0x3] %v1414_v0  ;;  %v1612_v6 = vld [vmem:[%s1583_s9 + $0x28] sm:$0xff]  ;;  %v1618_v7 = vld [vmem:[%s1583_s9 + $0x30] sm:$0xff]  ;;  %s1079_s16 = scalar_lea.sflag [#allocation5], %s1577_s6 }
  0x5c   : > { %240 = vst [vmem:[#allocation2 + $0x198] sm:$0xff] %v1414_v0  ;;  %241 = vst [vmem:[#allocation2 + $0x1a0] sm:$0xff] %v1414_v0  ;;  %v1621_v8 = vld [vmem:[%s1583_s9 + $0x38] sm:$0xff]  ;;  %v1624_v9 = vld [vmem:[%s1583_s9 + $0x40] sm:$0xff]  ;;  %s1336_s29 = scalar_lea.vmem %s2210_s10, 4096  ;;  %s1415_s23 = smov [#allocation8]  }
  0x5d   : > { %242 = vst [vmem:[#allocation2 + $0x1a8] sm:$0x3] %v1414_v0  ;;  %244 = vst [vmem:[#allocation2 + $0x18] sm:$0x1] %v1414_v0  ;;  %v1630_v10 = vld [vmem:[%s1583_s9 + $0x48] sm:$0xff]  ;;  %v1633_v11 = vld [vmem:[%s1583_s9 + $0x50] sm:$0xff]  ;;  %p1337_p4 = scmp.ne.s32.totalorder %s2210_s10, %s1336_s29 }
  0x5e   : > { %245 = vst [vmem:[#allocation2 + $0x30] sm:$0x1] %v1414_v0  ;;  %246 = vst [vmem:[#allocation2 + $0x48] sm:$0x1] %v1414_v0  ;;  %v1636_v12 = vld [vmem:[%s1583_s9 + $0x58] sm:$0xff]  ;;  %v1642_v13 = vld [vmem:[%s1583_s9 + $0x60] sm:$0xff] }
  0x5f   : > { %247 = vst [vmem:[#allocation2 + $0x60] sm:$0x1] %v1414_v0  ;;  %248 = vst [vmem:[#allocation2 + $0x78] sm:$0x1] %v1414_v0  ;;  %v1645_v14 = vld [vmem:[%s1583_s9 + $0x68] sm:$0xff]  ;;  %v1648_v15 = vld [vmem:[%s1583_s9 + $0x70] sm:$0xff]  ;;  %p1338_p6 = pnand %p1337_p4, %p1529_p12 }
  0x60   : > { %249 = vst [vmem:[#allocation2 + $0x90] sm:$0x1] %v1414_v0  ;;  %250 = vst [vmem:[#allocation2 + $0xa8] sm:$0x1] %v1414_v0  ;;  %v1654_v16 = vld [vmem:[%s1583_s9 + $0x78] sm:$0xff]  ;;  %v1657_v17 = vld [vmem:[%s1583_s9 + $0x80] sm:$0xff] }
  0x61   : > { %251 = vst [vmem:[#allocation2 + $0xc0] sm:$0x1] %v1414_v0  ;;  %252 = vst [vmem:[#allocation2 + $0xd8] sm:$0x1] %v1414_v0  ;;  %v1660_v18 = vld [vmem:[%s1583_s9 + $0x88] sm:$0xff]  ;;  %v1666_v19 = vld [vmem:[%s1583_s9 + $0x90] sm:$0xff]  ;;  %p1339_p8 = pneg %p1338_p6 }
  0x62   : > { %253 = vst [vmem:[#allocation2 + $0xf0] sm:$0x1] %v1414_v0  ;;  %254 = vst [vmem:[#allocation2 + $0x108] sm:$0x1] %v1414_v0  ;;  %v1669_v20 = vld [vmem:[%s1583_s9 + $0x98] sm:$0xff]  ;;  %v1672_v21 = vld [vmem:[%s1583_s9 + $0xa0] sm:$0xff] }
  0x63   : > { %255 = vst [vmem:[#allocation2 + $0x120] sm:$0x1] %v1414_v0  ;;  %256 = vst [vmem:[#allocation2 + $0x138] sm:$0x1] %v1414_v0  ;;  %v1678_v22 = vld [vmem:[%s1583_s9 + $0xa8] sm:$0xff]  ;;  %v1681_v23 = vld [vmem:[%s1583_s9 + $0xb0] sm:$0xff] }
  0x64   : > { %257 = vst [vmem:[#allocation2 + $0x150] sm:$0x1] %v1414_v0  ;;  %258 = vst [vmem:[#allocation2 + $0x168] sm:$0x1] %v1414_v0  ;;  %v227_v24 = vld [vmem:[%s1583_s9 + $0xb8] sm:$0xff]  ;;  %v228_v25 = vld [vmem:[%s1583_s9 + $0xc0] sm:$0xff] }
  0x65   : > { %259 = vst [vmem:[#allocation2 + $0x180] sm:$0x1] %v1414_v0  ;;  %260 = vst [vmem:[#allocation2 + $0x29] sm:$0x1] %v1414_v0  ;;  %v229_v26 = vld [vmem:[%s1583_s9 + $0xc8] sm:$0xff]  ;;  %v230_v27 = vld [vmem:[%s1583_s9 + $0xd0] sm:$0xff] }
  0x66   : > { %261 = vst [vmem:[#allocation2 + $0x41] sm:$0x1] %v1414_v0  ;;  %262 = vst [vmem:[#allocation2 + $0x59] sm:$0x1] %v1414_v0  ;;  %v231_v28 = vld [vmem:[%s1583_s9 + $0xd8] sm:$0xff]  ;;  %v232_v29 = vld [vmem:[%s1583_s9 + $0xe0] sm:$0xff] }
  0x67   : > { %263 = vst [vmem:[#allocation2 + $0x71] sm:$0x1] %v1414_v0  ;;  %264 = vst [vmem:[#allocation2 + $0x89] sm:$0x1] %v1414_v0  ;;  %v233_v30 = vld [vmem:[%s1583_s9 + $0xe8] sm:$0xff]  ;;  %v234_v31 = vld [vmem:[%s1583_s9 + $0xf0] sm:$0xff] }
  0x68   : > { %265 = vst [vmem:[#allocation2 + $0xa1] sm:$0x1] %v1414_v0  ;;  %266 = vst [vmem:[#allocation2 + $0xb9] sm:$0x1] %v1414_v0  ;;  %v235_v32 = vld [vmem:[%s1583_s9 + $0xf8] sm:$0xff]  ;;  %s1340_s30 = sshll.u32 %s1415_s23, 4  ;;  %s1341_s30 = int_to_ptr.vmem [resolvable:$false] %s1340_s30 }
  0x69   : > { %267 = vst [vmem:[#allocation2 + $0xd1] sm:$0x1] %v1414_v0  ;;  %268 = vst [vmem:[#allocation2 + $0xe9] sm:$0x1] %v1414_v0  ;;  %v344_v34 = vld [vmem:[#allocation2 + $0x1] sm:$0xff]  ;;  %v345_v54 = vld [vmem:[#allocation2 + $0x9] sm:$0xff]  ;;  %p1343_p10 = scmp.lt.s32.totalorder %s2210_s10, %s1341_s30 }
  0x6a   : > { %269 = vst [vmem:[#allocation2 + $0x101] sm:$0x1] %v1414_v0  ;;  %270 = vst [vmem:[#allocation2 + $0x119] sm:$0x1] %v1414_v0  ;;  %v380_v35 = vld [vmem:[#allocation2 + $0x2] sm:$0xff]  ;;  %v381_v61 = vld [vmem:[#allocation2 + $0xa] sm:$0xff] }
  0x6b   : > { %271 = vst [vmem:[#allocation2 + $0x131] sm:$0x1] %v1414_v0  ;;  %272 = vst [vmem:[#allocation2 + $0x149] sm:$0x1] %v1414_v0  ;;  %v1694_v37 = vld [vmem:[#allocation6] ss:$0 sm:$0xff] }
  0x6c   : > { %273 = vst [vmem:[#allocation2 + $0x161] sm:$0x1] %v1414_v0  ;;  %274 = vst [vmem:[#allocation2 + $0x179] sm:$0x1] %v1414_v0  ;;  %v421_v38 = vmul.f32 0.0, %v1694_v37  ;;  %s1342_s22 = scalar_lea.vmem %s1341_s30, 8192 }
  0x6d   : > { %275 = vst [vmem:[#allocation2 + $0x191] sm:$0x1] %v1414_v0  ;;  %276 = vst [vmem:[#allocation2 + $0x19] sm:$0xff] %v1594_v1  ;;  %v1698_v40 = vld [vmem:[#allocation6 + $0x1] ss:$0 sm:$0xff]  ;;  %p1344_p13 = scmp.lt.s32.totalorder %s1342_s22, %s1336_s29 }
  0x6e   : > { %277 = vst [vmem:[#allocation2 + $0x21] sm:$0xff] %v1597_v2  ;;  %278 = vst [vmem:[#allocation2 + $0x31] sm:$0xff] %v1600_v3  ;;  %v1700_v41 = vld [vmem:[#allocation6 + $0x2] ss:$0 sm:$0xff]  ;;  %v1702_v42 = vld [vmem:[#allocation6 + $0x4] ss:$0 sm:$0xff]  ;;  %v458_v45 = vmul.f32 %v1698_v40, %v344_v34  ;;  %v462_v46 = vmul.f32 %v1698_v40, %v1600_v3  ;;  %v460_v50 = vmul.f32 %v1698_v40, %v1594_v1 }
  0x6f   : > { %279 = vst [vmem:[#allocation2 + $0x39] sm:$0xff] %v1606_v4  ;;  %280 = vst [vmem:[#allocation2 + $0x49] sm:$0xff] %v1609_v5  ;;  %v527_v47 = vmul.f32 %v1700_v41, %v380_v35  ;;  %v1708_v48 = vld [vmem:[#allocation6 + $0x6] ss:$0 sm:$0xff]  ;;  %v1717_v59 = vld [vmem:[#allocation6 + $0x5] ss:$0 sm:$0xff]  ;;  %p1345_p3 = por %p1344_p13, %p1343_p10 }
  0x70   : > { %281 = vst [vmem:[#allocation2 + $0x51] sm:$0xff] %v1612_v6  ;;  %282 = vst [vmem:[#allocation2 + $0x61] sm:$0xff] %v1618_v7  ;;  %v490_v51 = vadd.f32 %v458_v45, %v421_v38  ;;  %v1719_v60 = vld [vmem:[#allocation6 + $0x8] ss:$0 sm:$0xff]  ;;  %v666_v63 = vmul.f32 %v1717_v59, %v1594_v1  ;;  %v668_v0 = vmul.f32 %v1717_v59, %v1600_v3 }
  0x71   : > { %283 = vst [vmem:[#allocation2 + $0x69] sm:$0xff] %v1621_v8  ;;  %284 = vst [vmem:[#allocation2 + $0x79] sm:$0xff] %v1624_v9  ;;  %v463_v1 = vmul.f32 %v1698_v40, %v1606_v4  ;;  %p1346_p7 = pnand %p1345_p3, %p1339_p8 }
  0x72   : > { %285 = vst [vmem:[#allocation2 + $0x81] sm:$0xff] %v1630_v10  ;;  %286 = vst [vmem:[#allocation2 + $0x91] sm:$0xff] %v1633_v11  ;;  %v559_v62 = vadd.f32 %v527_v47, %v490_v51 }
  0x73   : > { %287 = vst [vmem:[#allocation2 + $0x99] sm:$0xff] %v1636_v12  ;;  %288 = vst [vmem:[#allocation2 + $0xa9] sm:$0xff] %v1642_v13 }
  0x74   : > { %289 = vst [vmem:[#allocation2 + $0xb1] sm:$0xff] %v1645_v14  ;;  %290 = vst [vmem:[#allocation2 + $0xc1] sm:$0xff] %v1648_v15  ;;  %v310_v36 = vld [vmem:[#allocation2 + $0x18] sm:$0xff] }
  0x75   : > { %291 = vst [vmem:[#allocation2 + $0xc9] sm:$0xff] %v1654_v16  ;;  %292 = vst [vmem:[#allocation2 + $0xd9] sm:$0xff] %v1657_v17  ;;  %v312_v33 = vld [vmem:[#allocation2 + $0x30] sm:$0xff]  ;;  %v382_v43 = vld [vmem:[#allocation2 + $0x1a] sm:$0xff]  ;;  %v423_v49 = vmul.f32 %v1694_v37, %v310_v36  ;;  %v597_v52 = vmul.f32 %v1702_v42, %v310_v36 }
  0x76   : > { %293 = vst [vmem:[#allocation2 + $0xe1] sm:$0xff] %v1660_v18  ;;  %2285 = vst [vmem:[#allocation12_spill] sm:$0xff] %v1666_v19  ;;  %v425_v39 = vmul.f32 %v1694_v37, %v312_v33  ;;  %v384_v44 = vld [vmem:[#allocation2 + $0x32] sm:$0xff]  ;;  %v529_v56 = vmul.f32 %v1700_v41, %v382_v43  ;;  %v599_v58 = vmul.f32 %v1702_v42, %v312_v33  ;;  %v383_v35 = vld [vmem:[#allocation2 + $0x22] sm:$0xff] }
  0x77   : > { %2286 = vst [vmem:[#allocation13_spill] sm:$0xff] %v1669_v20  ;;  %2287 = vst [vmem:[#allocation14_spill] sm:$0xff] %v1672_v21  ;;  %v313_v53 = vld [vmem:[#allocation2 + $0x38] sm:$0xff]  ;;  %v531_v57 = vmul.f32 %v1700_v41, %v384_v44 }
  0x78   : > { %294 = vst [vmem:[#allocation2 + $0xf1] sm:$0xff] %v1666_v19  ;;  %295 = vst [vmem:[#allocation2 + $0xf9] sm:$0xff] %v1669_v20  ;;  %v494_v55 = vadd.f32 %v462_v46, %v425_v39  ;;  %v385_v36 = vld [vmem:[#allocation2 + $0x3a] sm:$0xff]  ;;  %v528_v39 = vmul.f32 %v1700_v41, %v381_v61 }
  0x79   : > { %296 = vst [vmem:[#allocation2 + $0x109] sm:$0xff] %v1672_v21  ;;  %2288 = vst [vmem:[#allocation15_spill] sm:$0xff] %v1678_v22 }
  0x7a   : > { %2289 = vst [vmem:[#allocation16_spill] sm:$0xff] %v1681_v23  ;;  %297 = vst [vmem:[#allocation2 + $0x111] sm:$0xff] %v1678_v22 }
  0x7b   : > { %298 = vst [vmem:[#allocation2 + $0x121] sm:$0xff] %v1681_v23  ;;  %299 = vst [vmem:[#allocation2 + $0x129] sm:$0xff] %v227_v24  ;;  %v735_v24 = vmul.f32 %v1708_v48, %v382_v43  ;;  %v1741_v43 = vadd.f32 %v531_v57, %v494_v55  ;;  %v532_v23 = vmul.f32 %v1700_v41, %v385_v36 }
  0x7c   : > { %300 = vst [vmem:[#allocation2 + $0x139] sm:$0xff] %v228_v25  ;;  %301 = vst [vmem:[#allocation2 + $0x141] sm:$0xff] %v229_v26  ;;  %v1726_v25 = vld [vmem:[#allocation6 + $0xa] ss:$0 sm:$0xff]  ;;  %v311_v26 = vld [vmem:[#allocation2 + $0x20] sm:$0xff]  ;;  %v667_v55 = vmul.f32 %v1717_v59, %v1597_v2  ;;  %v669_v57 = vmul.f32 %v1717_v59, %v1606_v4 }
  0x7d   : > { %302 = vst [vmem:[#allocation2 + $0x151] sm:$0xff] %v230_v27  ;;  %303 = vst [vmem:[#allocation2 + $0x159] sm:$0xff] %v231_v28  ;;  %v1729_v27 = vmul.f32 %v1708_v48, %v384_v44  ;;  %v1731_v28 = vld [vmem:[#allocation6 + $0x9] ss:$0 sm:$0xff]  ;;  %v943_v45 = vmul.f32 %v1726_v25, %v384_v44  ;;  %v598_v47 = vmul.f32 %v1702_v42, %v311_v26 }
  0x7e   : > { %304 = vst [vmem:[#allocation2 + $0x169] sm:$0xff] %v232_v29  ;;  %305 = vst [vmem:[#allocation2 + $0x171] sm:$0xff] %v233_v30  ;;  %v426_v29 = vmul.f32 %v1694_v37, %v313_v53  ;;  %v459_v30 = vmul.f32 %v1698_v40, %v345_v54  ;;  %v874_v34 = vmul.f32 %v1731_v28, %v1600_v3 }
  0x7f   : > { %306 = vst [vmem:[#allocation2 + $0x181] sm:$0xff] %v234_v31  ;;  %307 = vst [vmem:[#allocation2 + $0x189] sm:$0xff] %v235_v32  ;;  %v629_v31 = vadd.f32 %v597_v52, %v559_v62  ;;  %v805_v32 = vmul.f32 %v1719_v60, %v312_v33  ;;  %v424_v54 = vmul.f32 %v1694_v37, %v311_v26  ;;  %v314_v62 = vld [vmem:[#allocation2 + $0x48] sm:$0xff] }
  0x80   : > { %v491_v46 = vadd.f32 %v459_v30, %v421_v38  ;;  %v461_v33 = vmul.f32 %v1698_v40, %v1597_v2  ;;  %v495_v52 = vadd.f32 %v463_v1, %v426_v29  ;;  %v530_v3 = vmul.f32 %v1700_v41, %v383_v35  ;;  %v386_v30 = vld [vmem:[#allocation2 + $0x4a] sm:$0xff] }
  0x81   : > { %v698_v51 = vadd.f32 %v666_v63, %v629_v31  ;;  %v600_v38 = vmul.f32 %v1702_v42, %v313_v53  ;;  %v736_v63 = vmul.f32 %v1708_v48, %v383_v35  ;;  %v427_v29 = vmul.f32 %v1694_v37, %v314_v62 }
  0x82   : > { %v560_v61 = vadd.f32 %v528_v39, %v491_v46  ;;  %v464_v1 = vmul.f32 %v1698_v40, %v1609_v5  ;;  %v492_v31 = vadd.f32 %v460_v50, %v423_v49  ;;  %v315_v39 = vld [vmem:[#allocation2 + $0x50] sm:$0xff]  ;;  %v1759_v22 = vadd.f32 %v532_v23, %v495_v52  ;;  %v1772_v23 = vld [vmem:[%s2259_s2] ss:$0 sm:$0xff] }
  0x83   : > { %v767_v44 = vadd.f32 %v735_v24, %v698_v51  ;;  %v738_v2 = vmul.f32 %v1708_v48, %v385_v36  ;;  %v806_v24 = vmul.f32 %v1719_v60, %v313_v53  ;;  %v875_v35 = vmul.f32 %v1731_v28, %v1606_v4 }
  0x84   : > { %v630_v26 = vadd.f32 %v598_v47, %v560_v61  ;;  %v944_v47 = vmul.f32 %v1726_v25, %v385_v36  ;;  %v561_v61 = vadd.f32 %v529_v56, %v492_v31  ;;  %v533_v20 = vmul.f32 %v1700_v41, %v386_v30 }
  0x85   : > { %v837_v46 = vadd.f32 %v805_v32, %v767_v44  ;;  %v601_v49 = vmul.f32 %v1702_v42, %v314_v62  ;;  %v428_v50 = vmul.f32 %v1694_v37, %v315_v39  ;;  %v496_v32 = vadd.f32 %v464_v1, %v427_v29 }
  0x86   : > { %v699_v51 = vadd.f32 %v667_v55, %v630_v26  ;;  %v631_v52 = vadd.f32 %v599_v58, %v561_v61  ;;  %v465_v4 = vmul.f32 %v1698_v40, %v1612_v6  ;;  %v670_v56 = vmul.f32 %v1717_v59, %v1609_v5  ;;  %v387_v55 = vld [vmem:[#allocation2 + $0x52] sm:$0xff]  ;;  %v316_v58 = vld [vmem:[#allocation2 + $0x60] sm:$0xff] }
  0x87   : > { %v906_v21 = vadd.f32 %v874_v34, %v837_v46  ;;  %v739_v34 = vmul.f32 %v1708_v48, %v386_v30  ;;  %v493_v44 = vadd.f32 %v461_v33, %v424_v54  ;;  %v807_v46 = vmul.f32 %v1719_v60, %v314_v62 }
  0x88   : > { %v768_v53 = vadd.f32 %v736_v63, %v699_v51  ;;  %v700_v31 = vadd.f32 %v668_v0, %v631_v52  ;;  %v876_v63 = vmul.f32 %v1731_v28, %v1609_v5  ;;  %v565_v61 = vadd.f32 %v533_v20, %v496_v32  ;;  %v317_v32 = vld [vmem:[#allocation2 + $0x68] sm:$0xff] }
  0x89   : > { %v975_v36 = vadd.f32 %v943_v45, %v906_v21  ;;  %v945_v21 = vmul.f32 %v1726_v25, %v386_v30  ;;  %v497_v45 = vadd.f32 %v465_v4, %v428_v50  ;;  %v562_v1 = vadd.f32 %v530_v3, %v493_v44 }
  0x8a   : > { %v838_v26 = vadd.f32 %v806_v24, %v768_v53  ;;  %v769_v19 = vadd.f32 %v1729_v27, %v700_v31  ;;  %v534_v54 = vmul.f32 %v1700_v41, %v387_v55  ;;  %v602_v5 = vmul.f32 %v1702_v42, %v315_v39  ;;  %v388_v24 = vld [vmem:[#allocation2 + $0x62] sm:$0xff] }
  0x8b   : > { %v1014_v29 = vadd.f32 %v1772_v23, %v975_v36  ;;  %v632_v0 = vadd.f32 %v600_v38, %v562_v1  ;;  %v429_v33 = vmul.f32 %v1694_v37, %v316_v58  ;;  %v466_v62 = vmul.f32 %v1698_v40, %v1618_v7  ;;  %v318_v1 = vld [vmem:[#allocation2 + $0x78] sm:$0xff] }
  0x8c   : > { %v907_v51 = vadd.f32 %v875_v35, %v838_v26  ;;  %v839_v30 = vadd.f32 %v807_v46, %v769_v19  ;;  %v671_v20 = vmul.f32 %v1717_v59, %v1612_v6  ;;  %v740_v27 = vmul.f32 %v1708_v48, %v387_v55 }
  0x8d   : > { %1046 = vst [vmem:[%s1788_s4] sm:$0xff] %v1014_v29  ;;  %v1798_v35 = vadd.f32 %v534_v54, %v497_v45  ;;  %v701_v50 = vadd.f32 %v669_v57, %v632_v0  ;;  %v808_v53 = vmul.f32 %v1719_v60, %v315_v39  ;;  %v633_v38 = vadd.f32 %v601_v49, %v1741_v43 }
  0x8e   : > { %v976_v3 = vadd.f32 %v944_v47, %v907_v51  ;;  %v908_v4 = vadd.f32 %v876_v63, %v839_v30  ;;  %v877_v19 = vmul.f32 %v1731_v28, %v1612_v6  ;;  %v946_v47 = vmul.f32 %v1726_v25, %v387_v55  ;;  %v389_v55 = vld [vmem:[#allocation2 + $0x6a] sm:$0xff] }
  0x8f   : > { %v770_v36 = vadd.f32 %v738_v2, %v701_v50  ;;  %v498_v44 = vadd.f32 %v466_v62, %v429_v33  ;;  %v535_v26 = vmul.f32 %v1700_v41, %v388_v24  ;;  %v702_v31 = vadd.f32 %v670_v56, %v633_v38  ;;  %v390_v38 = vld [vmem:[#allocation2 + $0x7a] sm:$0xff] }
  0x90   : > { %v1015_v52 = vadd.f32 %v1772_v23, %v976_v3  ;;  %v977_v57 = vadd.f32 %v945_v21, %v908_v4  ;;  %v603_v39 = vmul.f32 %v1702_v42, %v316_v58  ;;  %v430_v43 = vmul.f32 %v1694_v37, %v317_v32 }
  0x91   : > { %v467_v49 = vmul.f32 %v1698_v40, %v1621_v8  ;;  %v840_v46 = vadd.f32 %v808_v53, %v770_v36  ;;  %v771_v63 = vadd.f32 %v739_v34, %v702_v31  ;;  %v809_v6 = vmul.f32 %v1719_v60, %v316_v58  ;;  %v319_v36 = vld [vmem:[#allocation2 + $0x80] sm:$0xff] }
  0x92   : > { %1047 = vst [vmem:[%s1788_s4 + $0x8] sm:$0xff] %v1015_v52  ;;  %v878_v2 = vmul.f32 %v1731_v28, %v1618_v7  ;;  %v1016_v56 = vadd.f32 %v1772_v23, %v977_v57  ;;  %v672_v29 = vmul.f32 %v1717_v59, %v1618_v7  ;;  %v741_v21 = vmul.f32 %v1708_v48, %v388_v24 }
  0x93   : > { %v634_v45 = vadd.f32 %v602_v5, %v1759_v22  ;;  %v909_v51 = vadd.f32 %v877_v19, %v840_v46  ;;  %v1820_v54 = vadd.f32 %v535_v26, %v498_v44  ;;  %v841_v34 = vadd.f32 %v809_v6, %v771_v63 }
  0x94   : > { %v947_v58 = vmul.f32 %v1726_v25, %v388_v24  ;;  %1048 = vst [vmem:[%s1788_s4 + $0x10] sm:$0xff] %v1016_v56  ;;  %v499_v0 = vadd.f32 %v467_v49, %v430_v43  ;;  %v536_v33 = vmul.f32 %v1700_v41, %v389_v55  ;;  %v604_v62 = vmul.f32 %v1702_v42, %v317_v32  ;;  %v391_v49 = vld [vmem:[#allocation2 + $0x82] sm:$0xff] }
  0x95   : > { %v703_v3 = vadd.f32 %v671_v20, %v634_v45  ;;  %v978_v30 = vadd.f32 %v946_v47, %v909_v51  ;;  %v910_v7 = vadd.f32 %v878_v2, %v841_v34  ;;  %v431_v50 = vmul.f32 %v1694_v37, %v318_v1 }
  0x96   : > { %v468_v22 = vmul.f32 %v1698_v40, %v1624_v9  ;;  %v810_v53 = vmul.f32 %v1719_v60, %v317_v32  ;;  %v879_v24 = vmul.f32 %v1731_v28, %v1621_v8  ;;  %v635_v52 = vadd.f32 %v603_v39, %v565_v61 }
  0x97   : > { %v772_v5 = vadd.f32 %v740_v27, %v703_v3  ;;  %v1017_v4 = vadd.f32 %v1772_v23, %v978_v30  ;;  %v979_v19 = vadd.f32 %v947_v58, %v910_v7  ;;  %v673_v20 = vmul.f32 %v1717_v59, %v1621_v8 }
  0x98   : > { %v742_v47 = vmul.f32 %v1708_v48, %v389_v55  ;;  %v948_v27 = vmul.f32 %v1726_v25, %v389_v55  ;;  %v500_v26 = vadd.f32 %v468_v22, %v431_v50  ;;  %v704_v32 = vadd.f32 %v672_v29, %v635_v52  ;;  %v320_v29 = vld [vmem:[#allocation2 + $0x90] sm:$0xff] }
  0x99   : > { %v842_v44 = vadd.f32 %v810_v53, %v772_v5  ;;  %1049 = vst [vmem:[%s1788_s4 + $0x18] sm:$0xff] %v1017_v4  ;;  %v1018_v31 = vadd.f32 %v1772_v23, %v979_v19  ;;  %v537_v61 = vmul.f32 %v1700_v41, %v390_v38  ;;  %v811_v57 = vmul.f32 %v1719_v60, %v318_v1  ;;  %v392_v22 = vld [vmem:[#allocation2 + $0x92] sm:$0xff] }
  0x9a   : > { %v880_v39 = vmul.f32 %v1731_v28, %v1624_v9  ;;  %v773_v43 = vadd.f32 %v741_v21, %v704_v32  ;;  %v432_v46 = vmul.f32 %v1694_v37, %v319_v36  ;;  %v469_v63 = vmul.f32 %v1698_v40, %v1630_v10  ;;  %v321_v53 = vld [vmem:[#allocation2 + $0x98] sm:$0xff] }
  0x9b   : > { %v911_v8 = vadd.f32 %v879_v24, %v842_v44  ;;  %1050 = vst [vmem:[%s1788_s4 + $0x20] sm:$0xff] %v1018_v31  ;;  %v568_v6 = vadd.f32 %v536_v33, %v499_v0  ;;  %v605_v2 = vmul.f32 %v1702_v42, %v318_v1  ;;  %v674_v55 = vmul.f32 %v1717_v59, %v1624_v9 }
  0x9c   : > { %v636_v56 = vadd.f32 %v604_v62, %v1798_v35  ;;  %v1851_v51 = vadd.f32 %v537_v61, %v500_v26  ;;  %v743_v21 = vmul.f32 %v1708_v48, %v390_v38  ;;  %v843_v34 = vadd.f32 %v811_v57, %v773_v43  ;;  %v393_v57 = vld [vmem:[#allocation2 + $0x9a] sm:$0xff] }
  0x9d   : > { %v980_v45 = vadd.f32 %v948_v27, %v911_v8  ;;  %v949_v58 = vmul.f32 %v1726_v25, %v390_v38  ;;  %v501_v3 = vadd.f32 %v469_v63, %v432_v46  ;;  %v538_v0 = vmul.f32 %v1700_v41, %v391_v49  ;;  %v322_v46 = vld [vmem:[#allocation2 + $0xa8] sm:$0xff] }
  0x9e   : > { %v705_v33 = vadd.f32 %v673_v20, %v636_v56  ;;  %v912_v30 = vadd.f32 %v880_v39, %v843_v34  ;;  %v606_v9 = vmul.f32 %v1702_v42, %v319_v36  ;;  %v433_v35 = vmul.f32 %v1694_v37, %v320_v29 }
  0x9f   : > { %v1019_v1 = vadd.f32 %v1772_v23, %v980_v45  ;;  %v812_v7 = vmul.f32 %v1719_v60, %v319_v36  ;;  %v881_v50 = vmul.f32 %v1731_v28, %v1630_v10  ;;  %v470_v5 = vmul.f32 %v1698_v40, %v1633_v11 }
  0xa0   : > { %v774_v62 = vadd.f32 %v742_v47, %v705_v33  ;;  %v981_v24 = vadd.f32 %v949_v58, %v912_v30  ;;  %v675_v38 = vmul.f32 %v1717_v59, %v1630_v10  ;;  %v744_v52 = vmul.f32 %v1708_v48, %v391_v49 }
  0xa1   : > { %1051 = vst [vmem:[%s1788_s4 + $0x28] sm:$0xff] %v1019_v1  ;;  %v637_v4 = vadd.f32 %v605_v2, %v1820_v54  ;;  %v570_v19 = vadd.f32 %v538_v0, %v501_v3  ;;  %v950_v47 = vmul.f32 %v1726_v25, %v391_v49  ;;  %v502_v36 = vadd.f32 %v470_v5, %v433_v35  ;;  %v323_v35 = vld [vmem:[#allocation2 + $0xb0] sm:$0xff] }
  0xa2   : > { %v844_v20 = vadd.f32 %v812_v7, %v774_v62  ;;  %v1020_v44 = vadd.f32 %v1772_v23, %v981_v24  ;;  %v539_v27 = vmul.f32 %v1700_v41, %v392_v22  ;;  %v434_v32 = vmul.f32 %v1694_v37, %v321_v53 }
  0xa3   : > { %v706_v26 = vadd.f32 %v674_v55, %v637_v4  ;;  %v607_v10 = vmul.f32 %v1702_v42, %v320_v29  ;;  %v676_v61 = vmul.f32 %v1717_v59, %v1633_v11  ;;  %v471_v54 = vmul.f32 %v1698_v40, %v1636_v12 }
  0xa4   : > { %v913_v31 = vadd.f32 %v881_v50, %v844_v20  ;;  %1052 = vst [vmem:[%s1788_s4 + $0x30] sm:$0xff] %v1020_v44  ;;  %v813_v8 = vmul.f32 %v1719_v60, %v320_v29  ;;  %v882_v43 = vmul.f32 %v1731_v28, %v1633_v11  ;;  %v638_v49 = vadd.f32 %v606_v9, %v568_v6  ;;  %v394_v9 = vld [vmem:[#allocation2 + $0xaa] sm:$0xff] }
  0xa5   : > { %v775_v39 = vadd.f32 %v743_v21, %v706_v26  ;;  %v1882_v2 = vadd.f32 %v539_v27, %v502_v36  ;;  %v745_v55 = vmul.f32 %v1708_v48, %v392_v22  ;;  %v951_v56 = vmul.f32 %v1726_v25, %v392_v22  ;;  %v395_v27 = vld [vmem:[#allocation2 + $0xb2] sm:$0xff] }
  0xa6   : > { %v982_v63 = vadd.f32 %v950_v47, %v913_v31  ;;  %v503_v34 = vadd.f32 %v471_v54, %v434_v32  ;;  %v540_v58 = vmul.f32 %v1700_v41, %v393_v57  ;;  %v707_v21 = vadd.f32 %v675_v38, %v638_v49 }
  0xa7   : > { %v845_v45 = vadd.f32 %v813_v8, %v775_v39  ;;  %v608_v3 = vmul.f32 %v1702_v42, %v321_v53  ;;  %v435_v11 = vmul.f32 %v1694_v37, %v322_v46  ;;  %v472_v6 = vmul.f32 %v1698_v40, %v1642_v13 }
  0xa8   : > { %v1021_v29 = vadd.f32 %v1772_v23, %v982_v63  ;;  %v776_v33 = vadd.f32 %v744_v52, %v707_v21  ;;  %v814_v1 = vmul.f32 %v1719_v60, %v321_v53  ;;  %v883_v30 = vmul.f32 %v1731_v28, %v1636_v12 }
  0xa9   : > { %v914_v0 = vadd.f32 %v882_v43, %v845_v45  ;;  %v677_v62 = vmul.f32 %v1717_v59, %v1636_v12  ;;  %v746_v7 = vmul.f32 %v1708_v48, %v393_v57  ;;  %v952_v50 = vmul.f32 %v1726_v25, %v393_v57 }
  0xaa   : > { %1053 = vst [vmem:[%s1788_s4 + $0x38] sm:$0xff] %v1021_v29  ;;  %v639_v22 = vadd.f32 %v607_v10, %v1851_v51  ;;  %v572_v24 = vadd.f32 %v540_v58, %v503_v34  ;;  %v846_v38 = vadd.f32 %v814_v1, %v776_v33  ;;  %v504_v53 = vadd.f32 %v472_v6, %v435_v11  ;;  %v396_v29 = vld [vmem:[#allocation2 + $0xc2] sm:$0xff] }
  0xab   : > { %v983_v5 = vadd.f32 %v951_v56, %v914_v0  ;;  %v541_v52 = vmul.f32 %v1700_v41, %v394_v9  ;;  %v609_v4 = vmul.f32 %v1702_v42, %v322_v46  ;;  %v436_v47 = vmul.f32 %v1694_v37, %v323_v35 }
  0xac   : > { %v708_v20 = vadd.f32 %v676_v61, %v639_v22  ;;  %v915_v36 = vadd.f32 %v883_v30, %v846_v38  ;;  %v678_v44 = vmul.f32 %v1717_v59, %v1642_v13  ;;  %v473_v51 = vmul.f32 %v1698_v40, %v1645_v14  ;;  %v324_v61 = vld [vmem:[#allocation2 + $0xc0] sm:$0xff] }
  0xad   : > { %v1022_v12 = vadd.f32 %v1772_v23, %v983_v5  ;;  %v815_v32 = vmul.f32 %v1719_v60, %v322_v46  ;;  %v884_v31 = vmul.f32 %v1731_v28, %v1642_v13  ;;  %v640_v10 = vadd.f32 %v608_v3, %v570_v19  ;;  %v325_v3 = vld [vmem:[#allocation2 + $0xc8] sm:$0xff] }
  0xae   : > { %v777_v26 = vadd.f32 %v745_v55, %v708_v20  ;;  %v984_v57 = vadd.f32 %v952_v50, %v915_v36  ;;  %v1913_v54 = vadd.f32 %v541_v52, %v504_v53  ;;  %v747_v39 = vmul.f32 %v1708_v48, %v394_v9  ;;  %v397_v53 = vld [vmem:[#allocation2 + $0xca] sm:$0xff] }
  0xaf   : > { %1054 = vst [vmem:[%s1788_s4 + $0x40] sm:$0xff] %v1022_v12  ;;  %v953_v8 = vmul.f32 %v1726_v25, %v394_v9  ;;  %v505_v49 = vadd.f32 %v473_v51, %v436_v47  ;;  %v542_v63 = vmul.f32 %v1700_v41, %v395_v27  ;;  %v709_v55 = vadd.f32 %v677_v62, %v640_v10  ;;  %v326_v12 = vld [vmem:[#allocation2 + $0xd8] sm:$0xff] }
  0xb0   : > { %v847_v43 = vadd.f32 %v815_v32, %v777_v26  ;;  %v1023_v46 = vadd.f32 %v1772_v23, %v984_v57  ;;  %v610_v13 = vmul.f32 %v1702_v42, %v323_v35  ;;  %v437_v19 = vmul.f32 %v1694_v37, %v324_v61 }
  0xb1   : > { %v474_v56 = vmul.f32 %v1698_v40, %v1648_v15  ;;  %v778_v34 = vadd.f32 %v746_v7, %v709_v55  ;;  %v816_v58 = vmul.f32 %v1719_v60, %v323_v35  ;;  %v885_v21 = vmul.f32 %v1731_v28, %v1645_v14  ;;  %v327_v55 = vld [vmem:[#allocation2 + $0xe0] sm:$0xff] }
  0xb2   : > { %v916_v45 = vadd.f32 %v884_v31, %v847_v43  ;;  %1055 = vst [vmem:[%s1788_s4 + $0x48] sm:$0xff] %v1023_v46  ;;  %v679_v11 = vmul.f32 %v1717_v59, %v1645_v14  ;;  %v748_v6 = vmul.f32 %v1708_v48, %v395_v27  ;;  %v954_v0 = vmul.f32 %v1726_v25, %v395_v27 }
  0xb3   : > { %v641_v33 = vadd.f32 %v609_v4, %v1882_v2  ;;  %v574_v30 = vadd.f32 %v542_v63, %v505_v49  ;;  %v848_v9 = vadd.f32 %v816_v58, %v778_v34  ;;  %v506_v35 = vadd.f32 %v474_v56, %v437_v19  ;;  %v398_v63 = vld [vmem:[#allocation2 + $0xda] sm:$0xff] }
  0xb4   : > { %v985_v1 = vadd.f32 %v953_v8, %v916_v45  ;;  %v543_v62 = vmul.f32 %v1700_v41, %v396_v29  ;;  %v611_v7 = vmul.f32 %v1702_v42, %v324_v61  ;;  %v438_v22 = vmul.f32 %v1694_v37, %v325_v3 }
  0xb5   : > { %v710_v50 = vadd.f32 %v678_v44, %v641_v33  ;;  %v917_v5 = vadd.f32 %v885_v21, %v848_v9  ;;  %v680_v38 = vmul.f32 %v1717_v59, %v1648_v15  ;;  %v475_v2 = vmul.f32 %v1698_v40, %v1654_v16 }
  0xb6   : > { %v1024_v14 = vadd.f32 %v1772_v23, %v985_v1  ;;  %v817_v4 = vmul.f32 %v1719_v60, %v324_v61  ;;  %v886_v20 = vmul.f32 %v1731_v28, %v1648_v15  ;;  %v642_v47 = vadd.f32 %v610_v13, %v572_v24  ;;  %v399_v1 = vld [vmem:[#allocation2 + $0xe2] sm:$0xff] }
  0xb7   : > { %v779_v52 = vadd.f32 %v747_v39, %v710_v50  ;;  %v986_v36 = vadd.f32 %v954_v0, %v917_v5  ;;  %v1944_v44 = vadd.f32 %v543_v62, %v506_v35  ;;  %v749_v27 = vmul.f32 %v1708_v48, %v396_v29  ;;  %v328_v50 = vld [vmem:[#allocation2 + $0xf0] sm:$0xff] }
  0xb8   : > { %1056 = vst [vmem:[%s1788_s4 + $0x50] sm:$0xff] %v1024_v14  ;;  %v955_v51 = vmul.f32 %v1726_v25, %v396_v29  ;;  %v507_v32 = vadd.f32 %v475_v2, %v438_v22  ;;  %v544_v31 = vmul.f32 %v1700_v41, %v397_v53  ;;  %v711_v10 = vadd.f32 %v679_v11, %v642_v47  ;;  %v2290_v47 = vld [vmem:[#allocation12_spill] sm:$0xff] }
  0xb9   : > { %v849_v26 = vadd.f32 %v817_v4, %v779_v52  ;;  %v1025_v61 = vadd.f32 %v1772_v23, %v986_v36  ;;  %v612_v15 = vmul.f32 %v1702_v42, %v325_v3  ;;  %v439_v24 = vmul.f32 %v1694_v37, %v326_v12 }
  0xba   : > { %v476_v57 = vmul.f32 %v1698_v40, %v1657_v17  ;;  %v780_v8 = vadd.f32 %v748_v6, %v711_v10  ;;  %v818_v43 = vmul.f32 %v1719_v60, %v325_v3  ;;  %v887_v49 = vmul.f32 %v1731_v28, %v1654_v16 }
  0xbb   : > { %v918_v39 = vadd.f32 %v886_v20, %v849_v26  ;;  %1057 = vst [vmem:[%s1788_s4 + $0x58] sm:$0xff] %v1025_v61  ;;  %v681_v46 = vmul.f32 %v1717_v59, %v1654_v16  ;;  %v750_v13 = vmul.f32 %v1708_v48, %v397_v53  ;;  %v956_v19 = vmul.f32 %v1726_v25, %v397_v53 }
  0xbc   : > { %v643_v56 = vadd.f32 %v611_v7, %v1913_v54  ;;  %v576_v34 = vadd.f32 %v544_v31, %v507_v32  ;;  %v850_v58 = vadd.f32 %v818_v43, %v780_v8  ;;  %v508_v21 = vadd.f32 %v476_v57, %v439_v24  ;;  %v400_v32 = vld [vmem:[#allocation2 + $0xf2] sm:$0xff] }
  0xbd   : > { %v987_v45 = vadd.f32 %v955_v51, %v918_v39  ;;  %v545_v29 = vmul.f32 %v1700_v41, %v398_v63  ;;  %v613_v3 = vmul.f32 %v1702_v42, %v326_v12  ;;  %v440_v6 = vmul.f32 %v1694_v37, %v327_v55  ;;  %v329_v31 = vld [vmem:[#allocation2 + $0xf8] sm:$0xff] }
  0xbe   : > { %v712_v11 = vadd.f32 %v680_v38, %v643_v56  ;;  %v919_v0 = vadd.f32 %v887_v49, %v850_v58  ;;  %v682_v33 = vmul.f32 %v1717_v59, %v1657_v17  ;;  %v477_v54 = vmul.f32 %v1698_v40, %v1660_v18  ;;  %v401_v56 = vld [vmem:[#allocation2 + $0xfa] sm:$0xff] }
  0xbf   : > { %v1026_v16 = vadd.f32 %v1772_v23, %v987_v45  ;;  %v819_v35 = vmul.f32 %v1719_v60, %v326_v12  ;;  %v888_v62 = vmul.f32 %v1731_v28, %v1657_v17  ;;  %v644_v7 = vadd.f32 %v612_v15, %v574_v30 }
  0xc0   : > { %v781_v9 = vadd.f32 %v749_v27, %v712_v11  ;;  %v988_v22 = vadd.f32 %v956_v19, %v919_v0  ;;  %v1975_v14 = vadd.f32 %v545_v29, %v508_v21  ;;  %v751_v5 = vmul.f32 %v1708_v48, %v398_v63  ;;  %v330_v11 = vld [vmem:[#allocation2 + $0x108] sm:$0xff] }
  0xc1   : > { %1058 = vst [vmem:[%s1788_s4 + $0x60] sm:$0xff] %v1026_v16  ;;  %v957_v38 = vmul.f32 %v1726_v25, %v398_v63  ;;  %v509_v2 = vadd.f32 %v477_v54, %v440_v6  ;;  %v546_v52 = vmul.f32 %v1700_v41, %v399_v1  ;;  %v713_v4 = vadd.f32 %v681_v46, %v644_v7 }
  0xc2   : > { %v851_v53 = vadd.f32 %v819_v35, %v781_v9  ;;  %v1027_v20 = vadd.f32 %v1772_v23, %v988_v22  ;;  %v614_v17 = vmul.f32 %v1702_v42, %v327_v55  ;;  %v441_v30 = vmul.f32 %v1694_v37, %v328_v50 }
  0xc3   : > { %v478_v12 = vmul.f32 %v1698_v40, %v2290_v47  ;;  %v782_v27 = vadd.f32 %v750_v13, %v713_v4  ;;  %v820_v51 = vmul.f32 %v1719_v60, %v327_v55  ;;  %v889_v26 = vmul.f32 %v1731_v28, %v1660_v18  ;;  %v331_v4 = vld [vmem:[#allocation2 + $0x110] sm:$0xff] }
  0xc4   : > { %v920_v36 = vadd.f32 %v888_v62, %v851_v53  ;;  %1059 = vst [vmem:[%s1788_s4 + $0x68] sm:$0xff] %v1027_v20  ;;  %v683_v10 = vmul.f32 %v1717_v59, %v1660_v18  ;;  %v752_v61 = vmul.f32 %v1708_v48, %v399_v1  ;;  %v958_v15 = vmul.f32 %v1726_v25, %v399_v1 }
  0xc5   : > { %v645_v24 = vadd.f32 %v613_v3, %v1944_v44  ;;  %v578_v39 = vadd.f32 %v546_v52, %v509_v2  ;;  %v852_v8 = vadd.f32 %v820_v51, %v782_v27  ;;  %v510_v43 = vadd.f32 %v478_v12, %v441_v30  ;;  %v2291_v44 = vld [vmem:[#allocation13_spill] sm:$0xff] }
  0xc6   : > { %v989_v57 = vadd.f32 %v957_v38, %v920_v36  ;;  %v547_v49 = vmul.f32 %v1700_v41, %v400_v32  ;;  %v615_v63 = vmul.f32 %v1702_v42, %v328_v50  ;;  %v442_v46 = vmul.f32 %v1694_v37, %v329_v31  ;;  %v402_v52 = vld [vmem:[#allocation2 + $0x10a] sm:$0xff] }
  0xc7   : > { %v714_v55 = vadd.f32 %v682_v33, %v645_v24  ;;  %v921_v13 = vadd.f32 %v889_v26, %v852_v8  ;;  %v684_v19 = vmul.f32 %v1717_v59, %v2290_v47  ;;  %v479_v45 = vmul.f32 %v1698_v40, %v2291_v44 }
  0xc8   : > { %v1028_v18 = vadd.f32 %v1772_v23, %v989_v57  ;;  %v821_v21 = vmul.f32 %v1719_v60, %v328_v50  ;;  %v890_v29 = vmul.f32 %v1731_v28, %v2290_v47  ;;  %v646_v3 = vadd.f32 %v614_v17, %v576_v34  ;;  %v2292_v50 = vld [vmem:[#allocation14_spill] sm:$0xff] }
  0xc9   : > { %v783_v58 = vadd.f32 %v751_v5, %v714_v55  ;;  %v990_v6 = vadd.f32 %v958_v15, %v921_v13  ;;  %v2006_v16 = vadd.f32 %v547_v49, %v510_v43  ;;  %v753_v0 = vmul.f32 %v1708_v48, %v400_v32  ;;  %v403_v57 = vld [vmem:[#allocation2 + $0x112] sm:$0xff] }
  0xca   : > { %1060 = vst [vmem:[%s1788_s4 + $0x70] sm:$0xff] %v1028_v18  ;;  %v959_v33 = vmul.f32 %v1726_v25, %v400_v32  ;;  %v511_v54 = vadd.f32 %v479_v45, %v442_v46  ;;  %v548_v9 = vmul.f32 %v1700_v41, %v401_v56  ;;  %v715_v35 = vadd.f32 %v683_v10, %v646_v3  ;;  %v332_v46 = vld [vmem:[#allocation2 + $0x120] sm:$0xff] }
  0xcb   : > { %v853_v1 = vadd.f32 %v821_v21, %v783_v58  ;;  %v1029_v62 = vadd.f32 %v1772_v23, %v990_v6  ;;  %v616_v7 = vmul.f32 %v1702_v42, %v329_v31  ;;  %v443_v34 = vmul.f32 %v1694_v37, %v330_v11 }
  0xcc   : > { %v480_v22 = vmul.f32 %v1698_v40, %v2292_v50  ;;  %v784_v38 = vadd.f32 %v752_v61, %v715_v35  ;;  %v822_v53 = vmul.f32 %v1719_v60, %v329_v31  ;;  %v891_v2 = vmul.f32 %v1731_v28, %v2291_v44  ;;  %v333_v35 = vld [vmem:[#allocation2 + $0x128] sm:$0xff] }
  0xcd   : > { %v922_v5 = vadd.f32 %v890_v29, %v853_v1  ;;  %1061 = vst [vmem:[%s1788_s4 + $0x78] sm:$0xff] %v1029_v62  ;;  %v685_v20 = vmul.f32 %v1717_v59, %v2291_v44  ;;  %v754_v17 = vmul.f32 %v1708_v48, %v401_v56  ;;  %v960_v30 = vmul.f32 %v1726_v25, %v401_v56 }
  0xce   : > { %v647_v47 = vadd.f32 %v615_v63, %v1975_v14  ;;  %v580_v36 = vadd.f32 %v548_v9, %v511_v54  ;;  %v854_v27 = vadd.f32 %v822_v53, %v784_v38  ;;  %v512_v51 = vadd.f32 %v480_v22, %v443_v34  ;;  %v2293_v14 = vld [vmem:[#allocation15_spill] sm:$0xff]  ;;  %v404_v9 = vld [vmem:[#allocation2 + $0x122] sm:$0xff] }
  0xcf   : > { %v991_v12 = vadd.f32 %v959_v33, %v922_v5  ;;  %v549_v26 = vmul.f32 %v1700_v41, %v402_v52  ;;  %v617_v32 = vmul.f32 %v1702_v42, %v330_v11  ;;  %v444_v10 = vmul.f32 %v1694_v37, %v331_v4  ;;  %v369_v22 = vld [vmem:[#allocation2 + $0x129] sm:$0xff] }
  0xd0   : > { %v716_v31 = vadd.f32 %v684_v19, %v647_v47  ;;  %v923_v15 = vadd.f32 %v891_v2, %v854_v27  ;;  %v686_v24 = vmul.f32 %v1717_v59, %v2292_v50  ;;  %v481_v8 = vmul.f32 %v1698_v40, %v2293_v14 }
  0xd1   : > { %v1030_v61 = vadd.f32 %v1772_v23, %v991_v12  ;;  %v823_v49 = vmul.f32 %v1719_v60, %v330_v11  ;;  %v892_v63 = vmul.f32 %v1731_v28, %v2292_v50  ;;  %v648_v55 = vadd.f32 %v616_v7, %v578_v39  ;;  %v2294_v11 = vld [vmem:[#allocation16_spill] sm:$0xff] }
  0xd2   : > { %v785_v43 = vadd.f32 %v753_v0, %v716_v31  ;;  %v992_v18 = vadd.f32 %v960_v30, %v923_v15  ;;  %v2037_v13 = vadd.f32 %v549_v26, %v512_v51  ;;  %v755_v19 = vmul.f32 %v1708_v48, %v402_v52 }
  0xd3   : > { %1062 = vst [vmem:[%s1788_s4 + $0x80] sm:$0xff] %v1030_v61  ;;  %v961_v56 = vmul.f32 %v1726_v25, %v402_v52  ;;  %v513_v45 = vadd.f32 %v481_v8, %v444_v10  ;;  %v550_v58 = vmul.f32 %v1700_v41, %v403_v57  ;;  %v717_v21 = vadd.f32 %v685_v20, %v648_v55  ;;  %v334_v10 = vld [vmem:[#allocation2 + $0x138] sm:$0xff] }
  0xd4   : > { %v855_v44 = vadd.f32 %v823_v49, %v785_v43  ;;  %v1031_v29 = vadd.f32 %v1772_v23, %v992_v18  ;;  %v618_v3 = vmul.f32 %v1702_v42, %v331_v4  ;;  %v445_v39 = vmul.f32 %v1694_v37, %v332_v46  ;;  %v370_v61 = vld [vmem:[#allocation2 + $0x139] sm:$0xff] }
  0xd5   : > { %v482_v6 = vmul.f32 %v1698_v40, %v2294_v11  ;;  %v786_v33 = vadd.f32 %v754_v17, %v717_v21  ;;  %v824_v1 = vmul.f32 %v1719_v60, %v331_v4  ;;  %v893_v54 = vmul.f32 %v1731_v28, %v2293_v14  ;;  %v335_v21 = vld [vmem:[#allocation2 + $0x140] sm:$0xff] }
  0xd6   : > { %v924_v0 = vadd.f32 %v892_v63, %v855_v44  ;;  %1063 = vst [vmem:[%s1788_s4 + $0x88] sm:$0xff] %v1031_v29  ;;  %v687_v62 = vmul.f32 %v1717_v59, %v2293_v14  ;;  %v756_v7 = vmul.f32 %v1708_v48, %v403_v57  ;;  %v962_v34 = vmul.f32 %v1726_v25, %v403_v57 }
  0xd7   : > { %v649_v50 = vadd.f32 %v617_v32, %v2006_v16  ;;  %v582_v38 = vadd.f32 %v550_v58, %v513_v45  ;;  %v856_v53 = vadd.f32 %v824_v1, %v786_v33  ;;  %v514_v2 = vadd.f32 %v482_v6, %v445_v39  ;;  %v405_v16 = vld [vmem:[#allocation2 + $0x12a] sm:$0xff]  ;;  %v406_v58 = vld [vmem:[#allocation2 + $0x13a] sm:$0xff] }
  0xd8   : > { %v993_v5 = vadd.f32 %v961_v56, %v924_v0  ;;  %v551_v52 = vmul.f32 %v1700_v41, %v404_v9  ;;  %v619_v4 = vmul.f32 %v1702_v42, %v332_v46  ;;  %v446_v17 = vmul.f32 %v1694_v37, %v333_v35  ;;  %v371_v6 = vld [vmem:[#allocation2 + $0x141] sm:$0xff] }
  0xd9   : > { %v718_v20 = vadd.f32 %v686_v24, %v649_v50  ;;  %v925_v47 = vadd.f32 %v893_v54, %v856_v53  ;;  %v688_v12 = vmul.f32 %v1717_v59, %v2294_v11  ;;  %v483_v27 = vmul.f32 %v1698_v40, %v369_v22 }
  0xda   : > { %v1032_v30 = vadd.f32 %v1772_v23, %v993_v5  ;;  %v825_v26 = vmul.f32 %v1719_v60, %v332_v46  ;;  %v894_v32 = vmul.f32 %v1731_v28, %v2294_v11  ;;  %v650_v31 = vadd.f32 %v618_v3, %v580_v36 }
  0xdb   : > { %v787_v51 = vadd.f32 %v755_v19, %v718_v20  ;;  %v994_v15 = vadd.f32 %v962_v34, %v925_v47  ;;  %v2067_v24 = vadd.f32 %v551_v52, %v514_v2  ;;  %v757_v57 = vmul.f32 %v1708_v48, %v404_v9  ;;  %v372_v20 = vld [vmem:[#allocation2 + $0x151] sm:$0xff] }
  0xdc   : > { %1064 = vst [vmem:[%s1788_s4 + $0x90] sm:$0xff] %v1032_v30  ;;  %v963_v14 = vmul.f32 %v1726_v25, %v404_v9  ;;  %v515_v43 = vadd.f32 %v483_v27, %v446_v17  ;;  %v552_v49 = vmul.f32 %v1700_v41, %v405_v16  ;;  %v719_v63 = vadd.f32 %v687_v62, %v650_v31  ;;  %v2105_v27 = vld [vmem:[#allocation6] ss:$0 sm:$0xff]  ;;  %v2111_v31 = vld [vmem:[#allocation6 + $0x5] ss:$0 sm:$0xff] }
  0xdd   : > { %v857_v8 = vadd.f32 %v825_v26, %v787_v51  ;;  %v1033_v55 = vadd.f32 %v1772_v23, %v994_v15  ;;  %v620_v36 = vmul.f32 %v1702_v42, %v333_v35  ;;  %v447_v46 = vmul.f32 %v1694_v37, %v334_v10  ;;  %v2108_v26 = vld [vmem:[#allocation6 + $0x1] ss:$0 sm:$0xff]  ;;  %v2114_v15 = vld [vmem:[#allocation6 + $0x8] ss:$0 sm:$0xff] }
  0xde   : > { %v484_v18 = vmul.f32 %v1698_v40, %v370_v61  ;;  %v689_v56 = vmul.f32 %v1717_v59, %v369_v22  ;;  %v788_v44 = vadd.f32 %v756_v7, %v719_v63  ;;  %v826_v45 = vmul.f32 %v1719_v60, %v333_v35 }
  0xdf   : > { %v926_v19 = vadd.f32 %v894_v32, %v857_v8  ;;  %1065 = vst [vmem:[%s1788_s4 + $0x98] sm:$0xff] %v1033_v55  ;;  %v758_v29 = vmul.f32 %v1708_v48, %v405_v16  ;;  %v895_v3 = vmul.f32 %v1731_v28, %v369_v22  ;;  %v964_v39 = vmul.f32 %v1726_v25, %v405_v16  ;;  %v337_v8 = vld [vmem:[#allocation2 + $0x158] sm:$0xff] }
  0xe0   : > { %v651_v11 = vadd.f32 %v619_v4, %v2037_v13  ;;  %v2083_v33 = vadd.f32 %v552_v49, %v515_v43  ;;  %v858_v1 = vadd.f32 %v826_v45, %v788_v44  ;;  %v516_v54 = vadd.f32 %v484_v18, %v447_v46  ;;  %v407_v13 = vld [vmem:[#allocation2 + $0x142] sm:$0xff]  ;;  %v2118_v43 = vld [vmem:[#allocation6 + $0x6] ss:$0 sm:$0xff]  ;;  %v2122_v55 = vld [vmem:[#allocation6 + $0xa] ss:$0 sm:$0xff] }
  0xe1   : > { %v995_v0 = vadd.f32 %v963_v14, %v926_v19  ;;  %v553_v9 = vmul.f32 %v1700_v41, %v406_v58  ;;  %v621_v35 = vmul.f32 %v1702_v42, %v334_v10  ;;  %v448_v7 = vmul.f32 %v1694_v37, %v335_v21  ;;  %v336_v41 = vld [vmem:[#allocation2 + $0x150] sm:$0xff]  ;;  %v373_v18 = vld [vmem:[#allocation2 + $0x159] sm:$0xff] }
  0xe2   : > { %v720_v62 = vadd.f32 %v688_v12, %v651_v11  ;;  %v927_v50 = vadd.f32 %v895_v3, %v858_v1  ;;  %v690_v22 = vmul.f32 %v1717_v59, %v370_v61  ;;  %v485_v5 = vmul.f32 %v1698_v40, %v371_v6  ;;  %v2098_v12 = vld [vmem:[#allocation6 + $0x2] ss:$0 sm:$0xff] }
  0xe3   : > { %v1034_v34 = vadd.f32 %v1772_v23, %v995_v0  ;;  %v759_v53 = vmul.f32 %v1708_v48, %v406_v58  ;;  %v827_v52 = vmul.f32 %v1719_v60, %v334_v10  ;;  %v652_v4 = vadd.f32 %v620_v36, %v582_v38  ;;  %v2102_v38 = vld [vmem:[#allocation6 + $0x4] ss:$0 sm:$0xff] }
  0xe4   : > { %v789_v2 = vadd.f32 %v757_v57, %v720_v62  ;;  %v996_v42 = vadd.f32 %v964_v39, %v927_v50  ;;  %v2094_v17 = vadd.f32 %v553_v9, %v516_v54  ;;  %v896_v37 = vmul.f32 %v1731_v28, %v370_v61  ;;  %v408_v14 = vld [vmem:[#allocation2 + $0x152] sm:$0xff]  ;;  %v374_v62 = vld [vmem:[#allocation2 + $0x169] sm:$0xff] }
  0xe5   : > { %1066 = vst [vmem:[%s1788_s4 + $0xa0] sm:$0xff] %v1034_v34  ;;  %v965_v30 = vmul.f32 %v1726_v25, %v406_v58  ;;  %v517_v47 = vadd.f32 %v485_v5, %v448_v7  ;;  %v554_v40 = vmul.f32 %v2098_v12, %v407_v13  ;;  %v721_v48 = vadd.f32 %v689_v56, %v652_v4  ;;  %v2136_v50 = vld [vmem:[#allocation6 + $0x9] ss:$0 sm:$0xff] }
  0xe6   : > { %v859_v59 = vadd.f32 %v827_v52, %v789_v2  ;;  %v1035_v60 = vadd.f32 %v1772_v23, %v996_v42  ;;  %v622_v16 = vmul.f32 %v2102_v38, %v335_v21  ;;  %v449_v51 = vmul.f32 %v2105_v27, %v336_v41 }
  0xe7   : > { %v486_v25 = vmul.f32 %v2108_v26, %v372_v20  ;;  %v691_v10 = vmul.f32 %v2111_v31, %v371_v6  ;;  %v790_v61 = vadd.f32 %v758_v29, %v721_v48  ;;  %v828_v57 = vmul.f32 %v2114_v15, %v335_v21 }
  0xe8   : > { %v928_v32 = vadd.f32 %v896_v37, %v859_v59  ;;  %1067 = vst [vmem:[%s1788_s4 + $0xa8] sm:$0xff] %v1035_v60  ;;  %v760_v49 = vmul.f32 %v2118_v43, %v407_v13  ;;  %v897_v63 = vmul.f32 %v1731_v28, %v371_v6  ;;  %v966_v36 = vmul.f32 %v2122_v55, %v407_v13  ;;  %v409_v6 = vld [vmem:[#allocation2 + $0x15a] sm:$0xff] }
  0xe9   : > { %v653_v46 = vadd.f32 %v621_v35, %v2067_v24  ;;  %v586_v56 = vadd.f32 %v554_v40, %v517_v47  ;;  %v860_v44 = vadd.f32 %v828_v57, %v790_v61  ;;  %v518_v45 = vadd.f32 %v486_v25, %v449_v51  ;;  %v338_v35 = vld [vmem:[#allocation2 + $0x168] sm:$0xff]  ;;  %v339_v40 = vld [vmem:[#allocation2 + $0x170] sm:$0xff] }
  0xea   : > { %v997_v19 = vadd.f32 %v965_v30, %v928_v32  ;;  %v555_v58 = vmul.f32 %v2098_v12, %v408_v14  ;;  %v623_v21 = vmul.f32 %v2102_v38, %v336_v41  ;;  %v450_v3 = vmul.f32 %v2105_v27, %v337_v8  ;;  %v410_v47 = vld [vmem:[#allocation2 + $0x16a] sm:$0xff] }
  0xeb   : > { %v722_v29 = vadd.f32 %v690_v22, %v653_v46  ;;  %v929_v39 = vadd.f32 %v897_v63, %v860_v44  ;;  %v692_v11 = vmul.f32 %v2111_v31, %v372_v20  ;;  %v487_v24 = vmul.f32 %v2108_v26, %v373_v18  ;;  %v375_v51 = vld [vmem:[#allocation2 + $0x171] sm:$0xff]  ;;  %v2158_v63 = vld [vmem:[%s2259_s2] ss:$0 sm:$0xff] }
  0xec   : > { %v1036_v28 = vadd.f32 %v1772_v23, %v997_v19  ;;  %v761_v0 = vmul.f32 %v2118_v43, %v408_v14  ;;  %v829_v54 = vmul.f32 %v2114_v15, %v336_v41  ;;  %v654_v9 = vadd.f32 %v622_v16, %v2083_v33 }
  0xed   : > { %v791_v1 = vadd.f32 %v759_v53, %v722_v29  ;;  %v998_v7 = vadd.f32 %v966_v36, %v929_v39  ;;  %v587_v34 = vadd.f32 %v555_v58, %v518_v45  ;;  %v898_v22 = vmul.f32 %v2136_v50, %v372_v20 }
  0xee   : > { %1068 = vst [vmem:[%s1788_s4 + $0xb0] sm:$0xff] %v1036_v28  ;;  %v967_v13 = vmul.f32 %v2122_v55, %v408_v14  ;;  %v519_v2 = vadd.f32 %v487_v24, %v450_v3  ;;  %v556_v53 = vmul.f32 %v2098_v12, %v409_v6  ;;  %v723_v52 = vadd.f32 %v691_v10, %v654_v9 }
  0xef   : > { %v861_v5 = vadd.f32 %v829_v54, %v791_v1  ;;  %v1037_v4 = vadd.f32 %v1772_v23, %v998_v7  ;;  %v624_v33 = vmul.f32 %v2102_v38, %v337_v8  ;;  %v451_v41 = vmul.f32 %v2105_v27, %v338_v35 }
  0xf0   : > { %v488_v42 = vmul.f32 %v2108_v26, %v374_v62  ;;  %v693_v30 = vmul.f32 %v2111_v31, %v373_v18  ;;  %v792_v20 = vadd.f32 %v760_v49, %v723_v52  ;;  %v830_v59 = vmul.f32 %v2114_v15, %v337_v8 }
  0xf1   : > { %v930_v37 = vadd.f32 %v898_v22, %v861_v5  ;;  %1069 = vst [vmem:[%s1788_s4 + $0xb8] sm:$0xff] %v1037_v4  ;;  %v762_v48 = vmul.f32 %v2118_v43, %v409_v6  ;;  %v899_v60 = vmul.f32 %v2136_v50, %v373_v18  ;;  %v968_v23 = vmul.f32 %v2122_v55, %v409_v6  ;;  %v411_v18 = vld [vmem:[#allocation2 + $0x172] sm:$0xff]  ;;  %v376_v22 = vld [vmem:[#allocation2 + $0x181] sm:$0xff] }
  0xf2   : > { %v655_v16 = vadd.f32 %v623_v21, %v2094_v17  ;;  %v588_v32 = vadd.f32 %v556_v53, %v519_v2  ;;  %v862_v10 = vadd.f32 %v830_v59, %v792_v20  ;;  %v520_v61 = vadd.f32 %v488_v42, %v451_v41  ;;  %v412_v2 = vld [vmem:[#allocation2 + $0x182] sm:$0xff] }
  0xf3   : > { %v999_v25 = vadd.f32 %v967_v13, %v930_v37  ;;  %v557_v57 = vmul.f32 %v2098_v12, %v410_v47  ;;  %v625_v14 = vmul.f32 %v2102_v38, %v338_v35  ;;  %v452_v49 = vmul.f32 %v2105_v27, %v339_v40  ;;  %v341_v13 = vld [vmem:[#allocation2 + $0x188] sm:$0xff] }
  0xf4   : > { %v724_v8 = vadd.f32 %v692_v11, %v655_v16  ;;  %v931_v36 = vadd.f32 %v899_v60, %v862_v10  ;;  %v694_v46 = vmul.f32 %v2111_v31, %v374_v62  ;;  %v489_v19 = vmul.f32 %v2108_v26, %v375_v51  ;;  %v340_v26 = vld [vmem:[#allocation2 + $0x180] sm:$0xff]  ;;  %v377_v20 = vld [vmem:[#allocation2 + $0x189] sm:$0xff] }
  0xf5   : > { %v1038_v17 = vadd.f32 %v2158_v63, %v999_v25  ;;  %v763_v44 = vmul.f32 %v2118_v43, %v410_v47  ;;  %v831_v58 = vmul.f32 %v2114_v15, %v338_v35  ;;  %v656_v21 = vadd.f32 %v624_v33, %v586_v56  ;;  %v413_v25 = vld [vmem:[#allocation2 + $0x18a] sm:$0xff] }
  0xf6   : > { %v793_v45 = vadd.f32 %v761_v0, %v724_v8  ;;  %v1000_v27 = vadd.f32 %v968_v23, %v931_v36  ;;  %v589_v29 = vadd.f32 %v557_v57, %v520_v61  ;;  %v900_v3 = vmul.f32 %v2136_v50, %v374_v62 }
  0xf7   : > { %1070 = vst [vmem:[%s1788_s4 + $0xc0] sm:$0xff] %v1038_v17  ;;  %v969_v28 = vmul.f32 %v2122_v55, %v410_v47  ;;  %v521_v11 = vadd.f32 %v489_v19, %v452_v49  ;;  %v558_v6 = vmul.f32 %v2098_v12, %v411_v18  ;;  %v725_v24 = vadd.f32 %v693_v30, %v656_v21  ;;  %v1277_v17 = vld [vmem:[#allocation2] sm:$0xff] }
  0xf8   : > { %v863_v39 = vadd.f32 %v831_v58, %v793_v45  ;;  %v1039_v1 = vadd.f32 %v2158_v63, %v1000_v27  ;;  %v626_v0 = vmul.f32 %v2102_v38, %v339_v40  ;;  %v695_v56 = vmul.f32 %v2111_v31, %v375_v51 }
  0xf9   : > { %v657_v54 = vadd.f32 %v625_v14, %v587_v34  ;;  %v764_v35 = vmul.f32 %v2118_v43, %v411_v18  ;;  %v794_v62 = vadd.f32 %v762_v48, %v725_v24  ;;  %v832_v7 = vmul.f32 %v2114_v15, %v339_v40  ;;  %v378_v14 = vld [vmem:[#allocation2 + $0x199] sm:$0xff] }
  0xfa   : > { %v932_v9 = vadd.f32 %v900_v3, %v863_v39  ;;  %1071 = vst [vmem:[%s1788_s4 + $0xc8] sm:$0xff] %v1039_v1  ;;  %v901_v12 = vmul.f32 %v2136_v50, %v375_v51  ;;  %v970_v5 = vmul.f32 %v2122_v55, %v411_v18  ;;  %v627_v53 = vmul.f32 %v2102_v38, %v340_v26 }
  0xfb   : > { %v726_v52 = vadd.f32 %v694_v46, %v657_v54  ;;  %v590_v33 = vadd.f32 %v558_v6, %v521_v11  ;;  %v864_v34 = vadd.f32 %v832_v7, %v794_v62  ;;  %v658_v41 = vadd.f32 %v626_v0, %v588_v32 }
  0xfc   : > { %v1001_v4 = vadd.f32 %v969_v28, %v932_v9  ;;  %v696_v42 = vmul.f32 %v2111_v31, %v376_v22  ;;  %v833_v30 = vmul.f32 %v2114_v15, %v340_v26  ;;  %v628_v59 = vmul.f32 %v2102_v38, %v341_v13  ;;  %v415_v26 = vld [vmem:[#allocation2 + $0x1a2] sm:$0xff] }
  0xfd   : > { %v795_v37 = vadd.f32 %v763_v44, %v726_v52  ;;  %v933_v40 = vadd.f32 %v901_v12, %v864_v34  ;;  %v765_v48 = vmul.f32 %v2118_v43, %v412_v2  ;;  %v727_v60 = vadd.f32 %v695_v56, %v658_v41 }
  0xfe   : > { %v1040_v47 = vadd.f32 %v2158_v63, %v1001_v4  ;;  %v902_v16 = vmul.f32 %v2136_v50, %v376_v22  ;;  %v971_v51 = vmul.f32 %v2122_v55, %v412_v2  ;;  %v659_v32 = vadd.f32 %v627_v53, %v589_v29 }
  0xff   : > { %v865_v23 = vadd.f32 %v833_v30, %v795_v37  ;;  %v1002_v10 = vadd.f32 %v970_v5, %v933_v40  ;;  %v697_v61 = vmul.f32 %v2111_v31, %v377_v20  ;;  %v796_v57 = vadd.f32 %v764_v35, %v727_v60  ;;  %v379_v31 = vld [vmem:[#allocation2 + $0x1a1] sm:$0xff] }
 0x100   : > { %1072 = vst [vmem:[%s1788_s4 + $0xd0] sm:$0xff] %v1040_v47  ;;  %v834_v38 = vmul.f32 %v2114_v15, %v341_v13  ;;  %v728_v49 = vadd.f32 %v696_v42, %v659_v32  ;;  %v835_v36 = vmul.f32 %v1277_v17, %v2114_v15  ;;  %v660_v46 = vadd.f32 %v628_v59, %v590_v33  ;;  %v414_v15 = vld [vmem:[#allocation2 + $0x19a] sm:$0xff] }
 0x101   : > { %v934_v8 = vadd.f32 %v902_v16, %v865_v23  ;;  %v1041_v18 = vadd.f32 %v2158_v63, %v1002_v10  ;;  %v766_v19 = vmul.f32 %v2118_v43, %v413_v25  ;;  %v903_v45 = vmul.f32 %v2136_v50, %v377_v20 }
 0x102   : > { %v866_v44 = vadd.f32 %v834_v38, %v796_v57  ;;  %v797_v21 = vadd.f32 %v765_v48, %v728_v49  ;;  %v904_v27 = vmul.f32 %v2136_v50, %v378_v14  ;;  %v729_v29 = vadd.f32 %v697_v61, %v660_v46 }
 0x103   : > { %v1003_v58 = vadd.f32 %v971_v51, %v934_v8  ;;  %1073 = vst [vmem:[%s1788_s4 + $0xd8] sm:$0xff] %v1041_v18  ;;  %v972_v28 = vmul.f32 %v2122_v55, %v413_v25  ;;  %v905_v6 = vmul.f32 %v2136_v50, %v379_v31  ;;  %v973_v0 = vmul.f32 %v2122_v55, %v414_v15 }
 0x104   : > { %v935_v3 = vadd.f32 %v903_v45, %v866_v44  ;;  %v867_v43 = vadd.f32 %v835_v36, %v797_v21  ;;  %v798_v11 = vadd.f32 %v766_v19, %v729_v29  ;;  %v974_v62 = vmul.f32 %v2122_v55, %v415_v26 }
 0x105   : > { %v1042_v39 = vadd.f32 %v2158_v63, %v1003_v58 }
 0x106   : > { %v1004_v24 = vadd.f32 %v972_v28, %v935_v3  ;;  %v936_v1 = vadd.f32 %v904_v27, %v867_v43  ;;  %v868_v56 = vadd.f32 %v835_v36, %v798_v11 }
 0x107   : > { %1074 = vst [vmem:[%s1788_s4 + $0xe0] sm:$0xff] %v1042_v39 }
 0x108   : > { %v1043_v54 = vadd.f32 %v2158_v63, %v1004_v24  ;;  %v1005_v9 = vadd.f32 %v973_v0, %v936_v1  ;;  %v937_v35 = vadd.f32 %v905_v6, %v868_v56 }
 0x10a   : > { %1075 = vst [vmem:[%s1788_s4 + $0xe8] sm:$0xff] %v1043_v54  ;;  %v1044_v50 = vadd.f32 %v2158_v63, %v1005_v9  ;;  %v1006_v7 = vadd.f32 %v974_v62, %v937_v35 }
 0x10c   : > { %1076 = vst [vmem:[%s1788_s4 + $0xf0] sm:$0xff] %v1044_v50  ;;  %v1045_v22 = vadd.f32 %v2158_v63, %v1006_v7 }
 0x10e   : > { %1077 = vst [vmem:[%s1788_s4 + $0xf8] sm:$0xff] %v1045_v22 }
 0x10f   : > { %1349 = shalt.err (!%p1346_p7)
}
 0x110   : > { %s1350_s7 = scalar_lea.hbm %s2208_s28, 4096  ;;  %s1354_s18 = scalar_lea.hbm %s2260_s3, 8192 }
 0x111   : > { %p1351_p9 = scmp.ne.s32.totalorder %s2208_s28, %s1350_s7  ;;  %p1355_p5 = scmp.lt.u32.totalorder %s2208_s28, %s2260_s3 }
 0x112   : > { %p1356_p11 = scmp.lt.u32.totalorder %s1354_s18, %s1350_s7  ;;  %p1358_p4 = scmp.lt.u32.totalorder %s1350_s7, %s2208_s28 }
 0x113   : > { %p1352_p2 = pnand %p1351_p9, %p1529_p12 }
 0x114   : > { %p1357_p1 = por %p1356_p11, %p1355_p5 }
 0x115   : > { %p1353_p0 = pneg %p1352_p2 }
 0x116   : > { %p1359_p6 = por %p1358_p4, %p1357_p1 }
 0x118   : > { %p1360_p8 = pnand %p1359_p6, %p1353_p0 }
 0x11a   : > { %1363 = shalt.err (!%p1360_p8)
}
 0x11b   : > { %s1416_s25 = smov 128   ;;  %s1417_s26 = smov 8  }
 0x11c   : > { %1209 = dma.vmem_to_hbm [thread:$0]  (%p1529_p12), %s2210_s10, 4096, %s2208_s28, %s1079_s16, %s1416_s25, %s1416_s25, %s1417_s26  }
 0x11d PF: > { %s1107_s5 = sand.u32 1, %s1394_s12   ;;  %p2295_p10 = scmp.ne.s32.totalorder %s2275_s19, 0 }
 0x11e   : > { %p2296_p13 = scmp.ge.s32.totalorder %s1406_s15, 2  ;;  %s1108_s11 = scalar_lea.sflag [#allocation5], %s1107_s5 }
 0x120   : > { %p1220_p3 = pnand %p2296_p13, %p2295_p10 }
 0x122   : > { %1389 = dma.done.wait (!%p1220_p3), %s1108_s11, 4096  }
 0x123   : > { %1391 = vsyncadd (!%p1220_p3), %s1108_s11, 4294963200  ;;  %p17_p7 = scmp.ge.s32.totalorder %s1494_s24, 4   ;;  %s2297_s12 = smov %s1398_s13 }
 0x124   : > { %s2298_s13 = smov %s1402_s14  ;;  %s2299_s14 = smov %s1525_s17 }
 0x125   : > { %s2300_s15 = smov %s1494_s24  ;;  %19 = sbr.rel (!%p17_p7) target bundleno = 6 (0x6), region = 85 }
 0x12c   :  { %1113 = vsyncpa [#allocation4], 1 }
 0x12d   :  { %1115 = vsyncpa [#allocation4 + $0x1], 1 }
 0x12e   :  { %1116 = vsyncpa [#allocation7], 1 }
 0x12f   :  { %1117 = vsyncpa [#allocation5], 1 }
 0x130   :  { %1119 = vsyncpa [#allocation5 + $0x1], 1 }

</bundles_post_ra>
